<compile_context>
chip_gen: v7x
topology: tpu7x:2x2x1
jax: 0.10.0
libtpu: 0.0.40
codegen_flags: <defaults>
</compile_context>

<pallas_src>
import functools
import math

import jax
import jax.numpy as jnp
from jax import lax
from jax.experimental import pallas as pl
from jax.experimental.pallas import tpu as pltpu

LANE = 128


def _round_up(v, m):
    return (v + m - 1) // m * m


# ------------------------------- fused kernel -------------------------------

def _gcl_fused_kernel(x_hbm, adj_ref, wg_ref, bg_ref, w1_ref, b1_ref,
                      w2_ref, b2_ref, emb_ref, z_ref, xw_scr, dma_sem, *extra,
                      nlayers, tm, n_tiles, adj_resident):
    """grid = (nlayers, row_tiles); layer axis outer & sequential."""
    if adj_resident:
        (adj_vmem,) = extra

    l = pl.program_id(0)          # GNN layer index (outer, sequential)
    i = pl.program_id(1)          # row-tile index (inner)
    is_last = l == nlayers - 1
    cur = l % 2                   # xw ping-pong slot holding THIS layer's xw
    nxt = 1 - cur                 # slot being filled with NEXT layer's xw
    r0 = pl.multiple_of(i * tm, tm)

    # ---- one-time prologue: bring x in, build layer-0's xw, stage Adj ----
    @pl.when((l == 0) & (i == 0))
    def _prologue():
        x_cp = pltpu.make_async_copy(x_hbm, xw_scr.at[1], dma_sem.at[0])
        x_cp.start()
        if adj_resident:
            adj_cp = pltpu.make_async_copy(adj_ref, adj_vmem, dma_sem.at[1])
            adj_cp.start()                      # overlaps with xw0 compute
        x_cp.wait()

        # xw_0 = x @ W_0 + b_0, in row chunks (bounds the f32 temporary).
        # x sits in slot 1, which is afterwards progressively overwritten with
        # layer 1's xw (x is fully consumed here, so the reuse is safe).
        def _chunk(c, carry):
            r = pl.multiple_of(c * tm, tm)
            acc = jnp.dot(xw_scr[1, pl.ds(r, tm), :], wg_ref[0],
                          preferred_element_type=jnp.float32) + bg_ref[0]
            xw_scr[0, pl.ds(r, tm), :] = acc.astype(xw_scr.dtype)
            return carry
        lax.fori_loop(0, n_tiles, _chunk, 0)

        if adj_resident:
            adj_cp.wait()

    # ---- dominant matmul: Adj row tile @ xw (contraction over all nodes) ----
    if adj_resident:
        a_tile = adj_vmem[pl.ds(r0, tm), :]
    else:
        a_tile = adj_ref[...]
    out = jnp.dot(a_tile, xw_scr[cur], preferred_element_type=jnp.float32)

    # Hidden layers: ReLU, then incrementally build the NEXT layer's xw rows
    # (h_rows @ W_{l+1} + b_{l+1}) so no layer-boundary stall remains.
    @pl.when(jnp.logical_not(is_last))
    def _hidden():
        h_rows = jnp.maximum(out, 0.0).astype(jnp.bfloat16)
        ln = jnp.minimum(l + 1, nlayers - 1)
        acc = jnp.dot(h_rows, wg_ref[ln],
                      preferred_element_type=jnp.float32) + bg_ref[ln]
        xw_scr[nxt, pl.ds(r0, tm), :] = acc.astype(xw_scr.dtype)

    # Last layer: linear embedding + fused projection head, written ONCE.
    @pl.when(is_last)
    def _last():
        emb_ref[pl.ds(r0, tm), :] = out
        e = out.astype(jnp.bfloat16)
        z1 = jnp.dot(e, w1_ref[...],
                     preferred_element_type=jnp.float32) + b1_ref[...]
        z1 = jnp.maximum(z1, 0.0).astype(jnp.bfloat16)
        z2 = jnp.dot(z1, w2_ref[...],
                     preferred_element_type=jnp.float32) + b2_ref[...]
        z_ref[pl.ds(r0, tm), :] = z2


# -------------------------- VMEM / tiling planning --------------------------

def _plan(np_rows, fp, pp, nlayers):
    """Generation-aware Adj residency decision, row-tile size, vmem limit."""
    try:
        cap = int(pltpu.get_tpu_info().vmem_capacity_bytes)
    except Exception:          # conservative default = v7x per-TC VMEM
        cap = 64 * 2**20
    budget = int(cap * 0.80)   # working-set target; leaves compiler headroom

    def temps(tm):
        # per-step value temporaries (Adj tile slice, f32 out/acc, proj tiles)
        return tm * np_rows * 2 + 4 * tm * fp * 4 + 2 * tm * pp * 4

    fixed = (2 * np_rows * fp * 2                    # xw ping-pong scratch
             + 2 * nlayers * fp * fp * 2             # GNN weight stack (2 bufs)
             + 2 * nlayers * 8 * fp * 4              # GNN bias stack
             + 2 * (fp * pp + pp * pp) * 2           # proj weights (2 bufs)
             + 2 * 2 * 8 * pp * 4                    # proj biases
             + 2 * np_rows * (fp + pp) * 4           # emb/z output blocks
             + (2 << 20))                            # general headroom

    adj_bytes = np_rows * np_rows * 2
    adj_resident = fixed + adj_bytes + temps(128) <= budget

    def largest_tile(limit_rows):
        best, t = 128, 256
        while t <= min(np_rows, limit_rows):
            if np_rows % t == 0:
                best = t
            t += 128
        return best

    if adj_resident:
        limit = 2048
        tm = largest_tile(limit)
        while tm > 128 and fixed + adj_bytes + temps(tm) > budget:
            limit = tm - 128
            tm = largest_tile(limit)
        need = fixed + adj_bytes + temps(tm)
    else:
        limit = 2048
        tm = largest_tile(limit)
        while tm > 128 and fixed + 2 * tm * np_rows * 2 + temps(tm) > budget:
            limit = tm - 128
            tm = largest_tile(limit)
        need = fixed + 2 * tm * np_rows * 2 + temps(tm)

    vmem_limit = int(min(cap * 0.88, max(need + (4 << 20), 24 << 20)))
    return adj_resident, tm, vmem_limit


# ------------------------------ host-side wrapper ----------------------------

def gcl_forward(params, x, adj):
    """Inference-mode GCL.forward -> (z, embedding). Dropouts are identity."""
    n, in_dim = x.shape
    gnn = params["gnn"]
    nlayers = len(gnn)
    emb_dim = gnn[-1][0].shape[1]
    proj_dim = params["proj2"][0].shape[1]

    # per-operand lane padding: GNN stack width vs proj-head width
    fp = _round_up(max([in_dim] + [w.shape[1] for w, _ in gnn]), LANE)
    pp = _round_up(proj_dim, LANE)
    np_rows = _round_up(n, LANE)

    adj_resident, tm, vmem_limit = _plan(np_rows, fp, pp, nlayers)
    assert np_rows % tm == 0
    n_tiles = np_rows // tm

    # ---- pad + pack operands (zero padding keeps the math exact) ----
    x_p = jnp.zeros((np_rows, fp), jnp.bfloat16).at[:n, :in_dim].set(
        x.astype(jnp.bfloat16))
    adj_p = jnp.zeros((np_rows, np_rows), jnp.bfloat16).at[:n, :n].set(
        adj.astype(jnp.bfloat16))

    wg = jnp.zeros((nlayers, fp, fp), jnp.bfloat16)
    bg = jnp.zeros((nlayers, 1, fp), jnp.float32)
    for li, (w, b) in enumerate(gnn):
        wg = wg.at[li, : w.shape[0], : w.shape[1]].set(w.astype(jnp.bfloat16))
        bg = bg.at[li, 0, : b.shape[0]].set(b)

    w1, b1 = params["proj1"]
    w2, b2 = params["proj2"]
    w1_p = jnp.zeros((fp, pp), jnp.bfloat16).at[: w1.shape[0], : w1.shape[1]].set(
        w1.astype(jnp.bfloat16))
    w2_p = jnp.zeros((pp, pp), jnp.bfloat16).at[: w2.shape[0], : w2.shape[1]].set(
        w2.astype(jnp.bfloat16))
    b1_p = jnp.zeros((1, pp), jnp.float32).at[0, : b1.shape[0]].set(b1)
    b2_p = jnp.zeros((1, pp), jnp.float32).at[0, : b2.shape[0]].set(b2)

    # ---- advisory cost estimate ----
    flops = int(nlayers * 2 * np_rows * np_rows * fp        # Adj @ xw
                + nlayers * 2 * np_rows * fp * fp           # h @ W (incl. layer 0)
                + 2 * np_rows * fp * pp + 2 * np_rows * pp * pp)
    adj_reads = 1 if adj_resident else nlayers
    bytes_accessed = int(adj_reads * np_rows * np_rows * 2
                         + np_rows * fp * 2
                         + nlayers * fp * fp * 2 + (fp * pp + pp * pp) * 2
                         + np_rows * (fp + pp) * 4)

    kernel = functools.partial(_gcl_fused_kernel, nlayers=nlayers, tm=tm,
                               n_tiles=n_tiles, adj_resident=adj_resident)

    adj_spec = (pl.BlockSpec(memory_space=pl.ANY) if adj_resident
                else pl.BlockSpec((tm, np_rows), lambda l, i: (i, 0)))

    scratch = [pltpu.VMEM((2, np_rows, fp), jnp.bfloat16),   # xw ping-pong
               pltpu.SemaphoreType.DMA((2,))]                # x / Adj DMA sems
    if adj_resident:
        scratch.append(pltpu.VMEM((np_rows, np_rows), jnp.bfloat16))

    emb_p, z_p = pl.pallas_call(
        kernel,
        out_shape=(jax.ShapeDtypeStruct((np_rows, fp), jnp.float32),
                   jax.ShapeDtypeStruct((np_rows, pp), jnp.float32)),
        grid_spec=pltpu.PrefetchScalarGridSpec(
            num_scalar_prefetch=0,
            grid=(nlayers, n_tiles),
            in_specs=[
                pl.BlockSpec(memory_space=pl.ANY),                     # x (HBM)
                adj_spec,                                              # Adj
                pl.BlockSpec((nlayers, fp, fp), lambda l, i: (0, 0, 0)),  # W stack
                pl.BlockSpec((nlayers, 1, fp), lambda l, i: (0, 0, 0)),   # b stack
                pl.BlockSpec((fp, pp), lambda l, i: (0, 0)),           # proj W1
                pl.BlockSpec((1, pp), lambda l, i: (0, 0)),            # proj b1
                pl.BlockSpec((pp, pp), lambda l, i: (0, 0)),           # proj W2
                pl.BlockSpec((1, pp), lambda l, i: (0, 0)),            # proj b2
            ],
            out_specs=[
                # constant index maps -> single HBM writeback at grid end
                pl.BlockSpec((np_rows, fp), lambda l, i: (0, 0)),      # embedding
                pl.BlockSpec((np_rows, pp), lambda l, i: (0, 0)),      # z
            ],
            scratch_shapes=scratch,
        ),
        compiler_params=pltpu.CompilerParams(
            dimension_semantics=("arbitrary", "arbitrary"),
            vmem_limit_bytes=vmem_limit,
        ),
        cost_estimate=pl.CostEstimate(flops=flops, transcendentals=0,
                                      bytes_accessed=bytes_accessed),
    )(x_p, adj_p, wg, bg, w1_p, b1_p, w2_p, b2_p)

    z = z_p[:n, :proj_dim]
    embedding = emb_p[:n, :emb_dim]
    return z, embedding


# ------------------------- parameter init & reference ------------------------

def _init_linear(key, in_dim, out_dim):
    # PyTorch nn.Linear default: U(-1/sqrt(in_dim), 1/sqrt(in_dim)) for W and b.
    kw, kb = jax.random.split(key)
    bound = 1.0 / math.sqrt(in_dim)
    w = jax.random.uniform(kw, (in_dim, out_dim), jnp.float32, -bound, bound)
    b = jax.random.uniform(kb, (out_dim,), jnp.float32, -bound, bound)
    return w, b


def init_gcl_params(key, nlayers, in_dim, hidden_dim, emb_dim, proj_dim):
    keys = jax.random.split(key, nlayers + 2)
    dims = [in_dim] + [hidden_dim] * (nlayers - 1) + [emb_dim]
    gnn = [_init_linear(keys[i], dims[i], dims[i + 1]) for i in range(nlayers)]
    proj1 = _init_linear(keys[nlayers], emb_dim, proj_dim)
    proj2 = _init_linear(keys[nlayers + 1], proj_dim, proj_dim)
    return {"gnn": gnn, "proj1": proj1, "proj2": proj2}


def gcl_forward_ref(params, x, adj):
    # Pure-JAX f32 reference of the same forward (for numeric validation).
    h = x
    for w, b in params["gnn"][:-1]:
        h = jnp.maximum(adj @ (h @ w + b), 0.0)
    w, b = params["gnn"][-1]
    emb = adj @ (h @ w + b)
    w1, b1 = params["proj1"]
    w2, b2 = params["proj2"]
    z = jnp.maximum(emb @ w1 + b1, 0.0) @ w2 + b2
    return z, emb


# ----------------------------------- main ------------------------------------

if __name__ == "__main__":
    key = jax.random.PRNGKey(0)
    k_x, k_adj, k_p = jax.random.split(key, 3)

    # small shapes consistent with the module
    N = 128          # number of graph nodes
    in_dim = 32
    hidden_dim = 32
    emb_dim = 16
    proj_dim = 16
    nlayers = 2

    x = jax.random.normal(k_x, (N, in_dim), jnp.float32)
    # dense (row-normalized) adjacency
    adj_raw = jax.random.uniform(k_adj, (N, N), jnp.float32)
    adj = adj_raw / jnp.sum(adj_raw, axis=1, keepdims=True)

    params = init_gcl_params(k_p, nlayers, in_dim, hidden_dim, emb_dim, proj_dim)

    z, embedding = gcl_forward(params, x, adj)
    jax.block_until_ready((z, embedding))

    assert z.shape == (N, proj_dim)
    assert embedding.shape == (N, emb_dim)
    assert bool(jnp.all(jnp.isfinite(z))) and bool(jnp.all(jnp.isfinite(embedding)))

    # bf16-matmul kernel vs f32 reference (loose tolerance for bf16 operands).
    z_ref, emb_ref = gcl_forward_ref(params, x, adj)

    def _relerr(a, b):
        return float(jnp.max(jnp.abs(a - b)) / (jnp.max(jnp.abs(b)) + 1e-6))

    assert _relerr(embedding, emb_ref) < 0.08, _relerr(embedding, emb_ref)
    assert _relerr(z, z_ref) < 0.08, _relerr(z, z_ref)

    print("KERNEL_OK")
</pallas_src>

<mosaic_0001>
module attributes {stable_mosaic.version = 11 : i64} {
  func.func @_gcl_fused_kernel(%arg0: i32, %arg1: i32, %arg2: memref<128x128xbf16, #tpu.memory_space<any>>, %arg3: memref<128x128xbf16, #tpu.memory_space<any>>, %arg4: memref<2x128x128xbf16, #tpu.memory_space<vmem>>, %arg5: memref<2x1x128xf32, #tpu.memory_space<vmem>>, %arg6: memref<128x128xbf16, #tpu.memory_space<vmem>>, %arg7: memref<1x128xf32, #tpu.memory_space<vmem>>, %arg8: memref<128x128xbf16, #tpu.memory_space<vmem>>, %arg9: memref<1x128xf32, #tpu.memory_space<vmem>>, %arg10: memref<128x128xf32, #tpu.memory_space<vmem>>, %arg11: memref<128x128xf32, #tpu.memory_space<vmem>>, %arg12: memref<2x128x128xbf16, #tpu.memory_space<vmem>>, %arg13: memref<2x!tpu.dma_semaphore, #tpu.memory_space<semaphore_mem>>, %arg14: memref<128x128xbf16, #tpu.memory_space<vmem>>) attributes {dimension_semantics = [#tpu.dimension_semantics<arbitrary>, #tpu.dimension_semantics<arbitrary>], iteration_bounds = array<i64: 2, 1>, scalar_prefetch = 0 : i64, scratch_operands = 3 : i64, tpu.core_type = #tpu.core_type<tc>, window_params = [{}, {}, {pipeline_mode = #tpu.pipeline_mode<synchronous>, transform_indices = @transform_2, window_bounds = array<i64: 2, 128, 128>}, {pipeline_mode = #tpu.pipeline_mode<synchronous>, transform_indices = @transform_3, window_bounds = array<i64: 2, 1, 128>}, {pipeline_mode = #tpu.pipeline_mode<synchronous>, transform_indices = @transform_4, window_bounds = array<i64: 128, 128>}, {pipeline_mode = #tpu.pipeline_mode<synchronous>, transform_indices = @transform_5, window_bounds = array<i64: 1, 128>}, {pipeline_mode = #tpu.pipeline_mode<synchronous>, transform_indices = @transform_6, window_bounds = array<i64: 128, 128>}, {pipeline_mode = #tpu.pipeline_mode<synchronous>, transform_indices = @transform_7, window_bounds = array<i64: 1, 128>}, {pipeline_mode = #tpu.pipeline_mode<synchronous>, transform_indices = @transform_8, window_bounds = array<i64: 128, 128>}, {pipeline_mode = #tpu.pipeline_mode<synchronous>, transform_indices = @transform_9, window_bounds = array<i64: 128, 128>}]} {
    %c1_i32 = arith.constant 1 : i32
    %0 = arith.cmpi eq, %arg0, %c1_i32 : i32
    %c2_i32 = arith.constant 2 : i32
    %c0_i32 = arith.constant 0 : i32
    %1 = arith.cmpi eq, %c2_i32, %c0_i32 : i32
    %c1_i32_0 = arith.constant 1 : i32
    %2 = arith.select %1, %c1_i32_0, %c2_i32 : i32
    %3 = arith.remsi %arg0, %2 : i32
    %c0_i32_1 = arith.constant 0 : i32
    %4 = arith.cmpi ne, %3, %c0_i32_1 : i32
    %c0_i32_2 = arith.constant 0 : i32
    %5 = arith.cmpi slt, %3, %c0_i32_2 : i32
    %c0_i32_3 = arith.constant 0 : i32
    %6 = arith.cmpi slt, %2, %c0_i32_3 : i32
    %7 = arith.xori %5, %6 : i1
    %8 = arith.andi %7, %4 : i1
    %9 = arith.addi %3, %2 : i32
    %10 = arith.select %8, %9, %3 : i32
    %c1_i32_4 = arith.constant 1 : i32
    %11 = arith.subi %c1_i32_4, %10 : i32
    %c128_i32 = arith.constant 128 : i32
    %12 = arith.muli %arg1, %c128_i32 : i32
    %13 = tpu.assume_multiple %12, 128 : i32
    %c0_i32_5 = arith.constant 0 : i32
    %14 = arith.cmpi eq, %arg0, %c0_i32_5 : i32
    %c0_i32_6 = arith.constant 0 : i32
    %15 = arith.cmpi eq, %arg1, %c0_i32_6 : i32
    %16 = arith.andi %14, %15 : i1
    %17 = arith.extui %16 : i1 to i32
    %c0_i32_7 = arith.constant 0 : i32
    %18 = arith.cmpi ne, %17, %c0_i32_7 : i32
    scf.if %18 {
      %c1_i32_12 = arith.constant 1 : i32
      %c0_i32_13 = arith.constant 0 : i32
      %c0_i32_14 = arith.constant 0 : i32
      %c0_i32_15 = arith.constant 0 : i32
      %30 = tpu.memref_slice %arg12[%c1_i32_12, %c0_i32_14, %c0_i32_15] : memref<2x128x128xbf16, #tpu.memory_space<vmem>> -> memref<1x128x128xbf16, #tpu.memory_space<vmem>>
      %31 = tpu.memref_squeeze %30 : memref<1x128x128xbf16, #tpu.memory_space<vmem>> -> memref<128x128xbf16, #tpu.memory_space<vmem>>
      %32 = tpu.memref_slice %arg13[%c0_i32_13] : memref<2x!tpu.dma_semaphore, #tpu.memory_space<semaphore_mem>> -> memref<1x!tpu.dma_semaphore, #tpu.memory_space<semaphore_mem>>
      %33 = tpu.memref_squeeze %32 : memref<1x!tpu.dma_semaphore, #tpu.memory_space<semaphore_mem>> -> memref<!tpu.dma_semaphore, #tpu.memory_space<semaphore_mem>>
      tpu.enqueue_dma source(%arg2 : memref<128x128xbf16, #tpu.memory_space<any>>) target(%31 : memref<128x128xbf16, #tpu.memory_space<vmem>>) target_semaphore(%33 : memref<!tpu.dma_semaphore, #tpu.memory_space<semaphore_mem>>)
      %c1_i32_16 = arith.constant 1 : i32
      %34 = tpu.memref_slice %arg13[%c1_i32_16] : memref<2x!tpu.dma_semaphore, #tpu.memory_space<semaphore_mem>> -> memref<1x!tpu.dma_semaphore, #tpu.memory_space<semaphore_mem>>
      %35 = tpu.memref_squeeze %34 : memref<1x!tpu.dma_semaphore, #tpu.memory_space<semaphore_mem>> -> memref<!tpu.dma_semaphore, #tpu.memory_space<semaphore_mem>>
      tpu.enqueue_dma source(%arg3 : memref<128x128xbf16, #tpu.memory_space<any>>) target(%arg14 : memref<128x128xbf16, #tpu.memory_space<vmem>>) target_semaphore(%35 : memref<!tpu.dma_semaphore, #tpu.memory_space<semaphore_mem>>)
      %c1_i32_17 = arith.constant 1 : i32
      %c0_i32_18 = arith.constant 0 : i32
      %c0_i32_19 = arith.constant 0 : i32
      %c0_i32_20 = arith.constant 0 : i32
      %36 = tpu.memref_slice %arg12[%c1_i32_17, %c0_i32_19, %c0_i32_20] : memref<2x128x128xbf16, #tpu.memory_space<vmem>> -> memref<1x128x128xbf16, #tpu.memory_space<vmem>>
      %37 = tpu.memref_squeeze %36 : memref<1x128x128xbf16, #tpu.memory_space<vmem>> -> memref<128x128xbf16, #tpu.memory_space<vmem>>
      %38 = tpu.memref_slice %arg13[%c0_i32_18] : memref<2x!tpu.dma_semaphore, #tpu.memory_space<semaphore_mem>> -> memref<1x!tpu.dma_semaphore, #tpu.memory_space<semaphore_mem>>
      %39 = tpu.memref_squeeze %38 : memref<1x!tpu.dma_semaphore, #tpu.memory_space<semaphore_mem>> -> memref<!tpu.dma_semaphore, #tpu.memory_space<semaphore_mem>>
      tpu.wait_dma2 semaphore(%39 : memref<!tpu.dma_semaphore, #tpu.memory_space<semaphore_mem>>) src(%arg2 : memref<128x128xbf16, #tpu.memory_space<any>>) dst(%37 : memref<128x128xbf16, #tpu.memory_space<vmem>>)
      %c0_i32_21 = arith.constant 0 : i32
      %c128_i32_22 = arith.constant 128 : i32
      %40 = arith.muli %c0_i32_21, %c128_i32_22 : i32
      %41 = tpu.assume_multiple %40, 128 : i32
      %c1 = arith.constant 1 : index
      %42 = arith.index_cast %41 : i32 to index
      %c0_23 = arith.constant 0 : index
      %43 = vector.load %arg12[%c1, %42, %c0_23] : memref<2x128x128xbf16, #tpu.memory_space<vmem>>, vector<1x128x128xbf16>
      %44 = vector.shape_cast %43 : vector<1x128x128xbf16> to vector<128x128xbf16>
      %c0_24 = arith.constant 0 : index
      %c0_25 = arith.constant 0 : index
      %c0_26 = arith.constant 0 : index
      %45 = vector.load %arg4[%c0_24, %c0_25, %c0_26] : memref<2x128x128xbf16, #tpu.memory_space<vmem>>, vector<1x128x128xbf16>
      %46 = vector.shape_cast %45 : vector<1x128x128xbf16> to vector<128x128xbf16>
      %cst_27 = arith.constant dense<0.000000e+00> : vector<128x128xf32>
      %47 = tpu.matmul %44, %46, %cst_27 {dimension_numbers = #tpu.dot_dimension_numbers<[1], [0], [0], [1], [0, 0, 1, 1], [], []>} : vector<128x128xbf16>, vector<128x128xbf16>, vector<128x128xf32> -> vector<128x128xf32>
      %c0_28 = arith.constant 0 : index
      %c0_29 = arith.constant 0 : index
      %c0_30 = arith.constant 0 : index
      %48 = vector.load %arg5[%c0_28, %c0_29, %c0_30] : memref<2x1x128xf32, #tpu.memory_space<vmem>>, vector<1x1x128xf32>
      %49 = vector.shape_cast %48 : vector<1x1x128xf32> to vector<1x128xf32>
      %50 = vector.broadcast %49 : vector<1x128xf32> to vector<128x128xf32>
      %51 = arith.addf %47, %50 : vector<128x128xf32>
      %52 = arith.truncf %51 : vector<128x128xf32> to vector<128x128xbf16>
      %c0_31 = arith.constant 0 : index
      %53 = arith.index_cast %41 : i32 to index
      %c0_32 = arith.constant 0 : index
      %54 = vector.load %arg12[%c0_31, %53, %c0_32] : memref<2x128x128xbf16, #tpu.memory_space<vmem>>, vector<1x128x128xbf16>
      %55 = vector.shape_cast %54 : vector<1x128x128xbf16> to vector<128x128xbf16>
      %56 = vector.shape_cast %52 : vector<128x128xbf16> to vector<1x128x128xbf16>
      tpu.vector_store %arg12[%c0_31, %53, %c0_32], %56 {strides = array<i32>} : memref<2x128x128xbf16, #tpu.memory_space<vmem>>, vector<1x128x128xbf16>,
      %c1_i32_33 = arith.constant 1 : i32
      %c1_i32_34 = arith.constant 1 : i32
      %57 = tpu.memref_slice %arg13[%c1_i32_34] : memref<2x!tpu.dma_semaphore, #tpu.memory_space<semaphore_mem>> -> memref<1x!tpu.dma_semaphore, #tpu.memory_space<semaphore_mem>>
      %58 = tpu.memref_squeeze %57 : memref<1x!tpu.dma_semaphore, #tpu.memory_space<semaphore_mem>> -> memref<!tpu.dma_semaphore, #tpu.memory_space<semaphore_mem>>
      tpu.wait_dma2 semaphore(%58 : memref<!tpu.dma_semaphore, #tpu.memory_space<semaphore_mem>>) src(%arg3 : memref<128x128xbf16, #tpu.memory_space<any>>) dst(%arg14 : memref<128x128xbf16, #tpu.memory_space<vmem>>)
    } else {
    }
    %19 = arith.index_cast %13 : i32 to index
    %c0 = arith.constant 0 : index
    %20 = vector.load %arg14[%19, %c0] : memref<128x128xbf16, #tpu.memory_space<vmem>>, vector<128x128xbf16>
    %21 = arith.index_cast %10 : i32 to index
    %c0_8 = arith.constant 0 : index
    %c0_9 = arith.constant 0 : index
    %22 = vector.load %arg12[%21, %c0_8, %c0_9] : memref<2x128x128xbf16, #tpu.memory_space<vmem>>, vector<1x128x128xbf16>
    %23 = vector.shape_cast %22 : vector<1x128x128xbf16> to vector<128x128xbf16>
    %cst = arith.constant dense<0.000000e+00> : vector<128x128xf32>
    %24 = tpu.matmul %20, %23, %cst {dimension_numbers = #tpu.dot_dimension_numbers<[1], [0], [0], [1], [0, 0, 1, 1], [], []>} : vector<128x128xbf16>, vector<128x128xbf16>, vector<128x128xf32> -> vector<128x128xf32>
    %true = arith.constant true
    %25 = arith.xori %0, %true : i1
    %26 = arith.extui %25 : i1 to i32
    %c0_i32_10 = arith.constant 0 : i32
    %27 = arith.cmpi ne, %26, %c0_i32_10 : i32
    scf.if %27 {
      %cst_12 = arith.constant 0.000000e+00 : f32
      %30 = vector.broadcast %cst_12 : f32 to vector<128x128xf32>
      %31 = arith.maximumf %24, %30 : vector<128x128xf32>
      %32 = arith.truncf %31 : vector<128x128xf32> to vector<128x128xbf16>
      %c1_i32_13 = arith.constant 1 : i32
      %33 = arith.addi %arg0, %c1_i32_13 : i32
      %c1_i32_14 = arith.constant 1 : i32
      %34 = arith.minsi %33, %c1_i32_14 : i32
      %35 = arith.index_cast %34 : i32 to index
      %c0_15 = arith.constant 0 : index
      %c0_16 = arith.constant 0 : index
      %36 = vector.load %arg4[%35, %c0_15, %c0_16] : memref<2x128x128xbf16, #tpu.memory_space<vmem>>, vector<1x128x128xbf16>
      %37 = vector.shape_cast %36 : vector<1x128x128xbf16> to vector<128x128xbf16>
      %cst_17 = arith.constant dense<0.000000e+00> : vector<128x128xf32>
      %38 = tpu.matmul %32, %37, %cst_17 {dimension_numbers = #tpu.dot_dimension_numbers<[1], [0], [0], [1], [0, 0, 1, 1], [], []>} : vector<128x128xbf16>, vector<128x128xbf16>, vector<128x128xf32> -> vector<128x128xf32>
      %39 = arith.index_cast %34 : i32 to index
      %c0_18 = arith.constant 0 : index
      %c0_19 = arith.constant 0 : index
      %40 = vector.load %arg5[%39, %c0_18, %c0_19] : memref<2x1x128xf32, #tpu.memory_space<vmem>>, vector<1x1x128xf32>
      %41 = vector.shape_cast %40 : vector<1x1x128xf32> to vector<1x128xf32>
      %42 = vector.broadcast %41 : vector<1x128xf32> to vector<128x128xf32>
      %43 = arith.addf %38, %42 : vector<128x128xf32>
      %44 = arith.truncf %43 : vector<128x128xf32> to vector<128x128xbf16>
      %45 = arith.index_cast %11 : i32 to index
      %46 = arith.index_cast %13 : i32 to index
      %c0_20 = arith.constant 0 : index
      %47 = vector.load %arg12[%45, %46, %c0_20] : memref<2x128x128xbf16, #tpu.memory_space<vmem>>, vector<1x128x128xbf16>
      %48 = vector.shape_cast %47 : vector<1x128x128xbf16> to vector<128x128xbf16>
      %49 = vector.shape_cast %44 : vector<128x128xbf16> to vector<1x128x128xbf16>
      tpu.vector_store %arg12[%45, %46, %c0_20], %49 {strides = array<i32>} : memref<2x128x128xbf16, #tpu.memory_space<vmem>>, vector<1x128x128xbf16>,
    } else {
    }
    %28 = arith.extui %0 : i1 to i32
    %c0_i32_11 = arith.constant 0 : i32
    %29 = arith.cmpi ne, %28, %c0_i32_11 : i32
    scf.if %29 {
      %30 = arith.index_cast %13 : i32 to index
      %c0_12 = arith.constant 0 : index
      %31 = vector.load %arg10[%30, %c0_12] : memref<128x128xf32, #tpu.memory_space<vmem>>, vector<128x128xf32>
      tpu.vector_store %arg10[%30, %c0_12], %24 {strides = array<i32>} : memref<128x128xf32, #tpu.memory_space<vmem>>, vector<128x128xf32>,
      %32 = arith.truncf %24 : vector<128x128xf32> to vector<128x128xbf16>
      %c0_13 = arith.constant 0 : index
      %c0_14 = arith.constant 0 : index
      %33 = vector.load %arg6[%c0_13, %c0_14] : memref<128x128xbf16, #tpu.memory_space<vmem>>, vector<128x128xbf16>
      %cst_15 = arith.constant dense<0.000000e+00> : vector<128x128xf32>
      %34 = tpu.matmul %32, %33, %cst_15 {dimension_numbers = #tpu.dot_dimension_numbers<[1], [0], [0], [1], [0, 0, 1, 1], [], []>} : vector<128x128xbf16>, vector<128x128xbf16>, vector<128x128xf32> -> vector<128x128xf32>
      %c0_16 = arith.constant 0 : index
      %c0_17 = arith.constant 0 : index
      %35 = vector.load %arg7[%c0_16, %c0_17] : memref<1x128xf32, #tpu.memory_space<vmem>>, vector<1x128xf32>
      %36 = vector.broadcast %35 : vector<1x128xf32> to vector<128x128xf32>
      %37 = arith.addf %34, %36 : vector<128x128xf32>
      %cst_18 = arith.constant 0.000000e+00 : f32
      %38 = vector.broadcast %cst_18 : f32 to vector<128x128xf32>
      %39 = arith.maximumf %37, %38 : vector<128x128xf32>
      %40 = arith.truncf %39 : vector<128x128xf32> to vector<128x128xbf16>
      %c0_19 = arith.constant 0 : index
      %c0_20 = arith.constant 0 : index
      %41 = vector.load %arg8[%c0_19, %c0_20] : memref<128x128xbf16, #tpu.memory_space<vmem>>, vector<128x128xbf16>
      %cst_21 = arith.constant dense<0.000000e+00> : vector<128x128xf32>
      %42 = tpu.matmul %40, %41, %cst_21 {dimension_numbers = #tpu.dot_dimension_numbers<[1], [0], [0], [1], [0, 0, 1, 1], [], []>} : vector<128x128xbf16>, vector<128x128xbf16>, vector<128x128xf32> -> vector<128x128xf32>
      %c0_22 = arith.constant 0 : index
      %c0_23 = arith.constant 0 : index
      %43 = vector.load %arg9[%c0_22, %c0_23] : memref<1x128xf32, #tpu.memory_space<vmem>>, vector<1x128xf32>
      %44 = vector.broadcast %43 : vector<1x128xf32> to vector<128x128xf32>
      %45 = arith.addf %42, %44 : vector<128x128xf32>
      %46 = arith.index_cast %13 : i32 to index
      %c0_24 = arith.constant 0 : index
      %47 = vector.load %arg11[%46, %c0_24] : memref<128x128xf32, #tpu.memory_space<vmem>>, vector<128x128xf32>
      tpu.vector_store %arg11[%46, %c0_24], %45 {strides = array<i32>} : memref<128x128xf32, #tpu.memory_space<vmem>>, vector<128x128xf32>,
    } else {
    }
    return
  }
  func.func @transform_2(%arg0: i32, %arg1: i32) -> (i32, i32, i32) {
    %c0_i32 = arith.constant 0 : i32
    %c0_i32_0 = arith.constant 0 : i32
    %c0_i32_1 = arith.constant 0 : i32
    %c0_i32_2 = arith.constant 0 : i32
    return %c0_i32, %c0_i32_0, %c0_i32_1 : i32, i32, i32
  }
  func.func @transform_3(%arg0: i32, %arg1: i32) -> (i32, i32, i32) {
    %c0_i32 = arith.constant 0 : i32
    %c0_i32_0 = arith.constant 0 : i32
    %c0_i32_1 = arith.constant 0 : i32
    %c0_i32_2 = arith.constant 0 : i32
    return %c0_i32, %c0_i32_0, %c0_i32_1 : i32, i32, i32
  }
  func.func @transform_4(%arg0: i32, %arg1: i32) -> (i32, i32) {
    %c0_i32 = arith.constant 0 : i32
    %c0_i32_0 = arith.constant 0 : i32
    %c0_i32_1 = arith.constant 0 : i32
    return %c0_i32, %c0_i32_0 : i32, i32
  }
  func.func @transform_5(%arg0: i32, %arg1: i32) -> (i32, i32) {
    %c0_i32 = arith.constant 0 : i32
    %c0_i32_0 = arith.constant 0 : i32
    %c0_i32_1 = arith.constant 0 : i32
    return %c0_i32, %c0_i32_0 : i32, i32
  }
  func.func @transform_6(%arg0: i32, %arg1: i32) -> (i32, i32) {
    %c0_i32 = arith.constant 0 : i32
    %c0_i32_0 = arith.constant 0 : i32
    %c0_i32_1 = arith.constant 0 : i32
    return %c0_i32, %c0_i32_0 : i32, i32
  }
  func.func @transform_7(%arg0: i32, %arg1: i32) -> (i32, i32) {
    %c0_i32 = arith.constant 0 : i32
    %c0_i32_0 = arith.constant 0 : i32
    %c0_i32_1 = arith.constant 0 : i32
    return %c0_i32, %c0_i32_0 : i32, i32
  }
  func.func @transform_8(%arg0: i32, %arg1: i32) -> (i32, i32) {
    %c0_i32 = arith.constant 0 : i32
    %c0_i32_0 = arith.constant 0 : i32
    %c0_i32_1 = arith.constant 0 : i32
    return %c0_i32, %c0_i32_0 : i32, i32
  }
  func.func @transform_9(%arg0: i32, %arg1: i32) -> (i32, i32) {
    %c0_i32 = arith.constant 0 : i32
    %c0_i32_0 = arith.constant 0 : i32
    %c0_i32_1 = arith.constant 0 : i32
    return %c0_i32, %c0_i32_0 : i32, i32
  }
}

</mosaic_0001>

<bundles_post_ra>
// kernel: tpu_custom_call.1
= control target key start
LH: loop header
LB: loop body
LE: loop exit
PB: predicated region body
PF: predicated region fallthrough
CT: control target
= control target key end

     0   :  { %15 = vsyncpa [#allocation6], 0  ;;  %s2526_s0 = inlined_call_operand.hbm [shape: bf16[128,128], index: 0, kind: input, shape index: {}]   ;;  %s2527_s1 = inlined_call_operand.hbm [shape: bf16[128,128], index: 1, kind: input, shape index: {}]   ;;  %s2528_s2 = inlined_call_operand.hbm [shape: bf16[2,128,128], index: 2, kind: input, shape index: {}]   ;;  %s2529_s3 = inlined_call_operand.vmem [shape: f32[2,1,128], index: 3, kind: input, shape index: {}]   ;;  %s2530_s4 = inlined_call_operand.hbm [shape: bf16[128,128], index: 4, kind: input, shape index: {}]   ;;  %s2531_s5 = inlined_call_operand.vmem [shape: f32[1,128], index: 5, kind: input, shape index: {}]   ;;  %s2532_s6 = inlined_call_operand.hbm [shape: bf16[128,128], index: 6, kind: input, shape index: {}]   ;;  %s2533_s7 = inlined_call_operand.vmem [shape: f32[1,128], index: 7, kind: input, shape index: {}]   ;;  %s2534_s8 = inlined_call_operand.hbm [shape: f32[128,128], index: 8, kind: output, shape index: {0}]   ;;  %s2535_s9 = inlined_call_operand.hbm [shape: f32[128,128], index: 9, kind: output, shape index: {1}]  }
   0x1   :  { %16 = vsyncpa [#allocation9], 0 }
   0x2   :  { %17 = vsyncpa [#allocation7], 0 }
   0x3   :  { %18 = vsyncpa [#allocation13], 0  ;;  %s2176_s30 = smov 0   ;;  %s2178_s10 = smov 0  }
   0x4   :  { %s2180_s11 = smov 0  }
   0x5 LB: > { %2541 = sst [smem:[#allocation26_spill]] %s2108_s10  ;;  %s2538_s12 = sadd.s32 4294967295, %s2112_s11   ;;  %s2112_s11 = sphi %s2180_s11, %s24_s11   ;;  %s2108_s10 = sphi %s2178_s10, %s2552_s10   ;;  %s2104_s30 = sphi %s2176_s30, %s2551_s30  }
   0x6   : > { %p1427_p0 = scmp.ge.s32.totalorder %s2112_s11, 1  ;;  %p209_p1 = scmp.lt.s32.totalorder %s2112_s11, 3 }
   0x7   : > { %p2196_p2 = scmp.eq.s32.totalorder %s2538_s12, 0  ;;  %s2114_s15 = smov [#allocation8]  }
   0x8   : > { %p2200_p3 = pnand %p1427_p0, %p209_p1  ;;  %s237_s16 = sshll.u32 %s2114_s15, 4  ;;  %s2204_s16 = int_to_ptr.vmem [resolvable:$true] %s237_s16 }
   0x9   : > { %s2542_s13 = scalar_select %p2196_p2, 1, 0 }
   0xa   : > { %s2543_s14 = scalar_select %p2200_p3, 1, 0 }
   0xb   : > { %p1803_p4 = pneg %p2200_p3  ;;  %s36_s18 = sadd.s32 1, %s2108_s10 }
   0xc   : > { %p2215_p6 = scmp.ge.s32.totalorder %s36_s18, 2  ;;  %s2115_s20 = smov [#allocation5]  }
   0xd   : > { %p2210_p5 = pnand %p2196_p2, %p1803_p4  ;;  %s221_s21 = sshll.u32 %s2115_s20, 4  ;;  %s222_s21 = int_to_ptr.vmem [resolvable:$true] %s221_s21 }
   0xe   : > { %s1890_s24 = scalar_lea.hbm %s2530_s4, 1024 }
   0xf   : > { %p1891_p7 = scmp.ne.s32.totalorder %s2530_s4, %s1890_s24  ;;  %p2227_p8 = pneg %p2210_p5 }
  0x10   : > { %p1897_p11 = scmp.lt.u32.totalorder %s1890_s24, %s2530_s4 }
  0x11   : > { %p1893_p9 = pnand %p2227_p8, %p1891_p7 }
  0x13   : > { %p1894_p10 = pneg %p1893_p9 }
  0x15   : > { %p1899_p12 = pnand %p1897_p11, %p1894_p10 }
  0x17   : > { %1902 = shalt.err (!%p1899_p12)
}
  0x18   : > { %s1903_s15 = scalar_lea.vmem %s2204_s16, 1024  ;;  %p1911_p4 = scmp.lt.s32.totalorder %s2204_s16, %s2204_s16 }
  0x19   : > { %p1904_p13 = scmp.ne.s32.totalorder %s2204_s16, %s1903_s15  ;;  %p1912_p2 = scmp.lt.s32.totalorder %s1903_s15, %s1903_s15 }
  0x1b   : > { %p1906_p0 = pnand %p1904_p13, %p2227_p8  ;;  %p1913_p7 = por %p1912_p2, %p1911_p4 }
  0x1d   : > { %p1907_p1 = pneg %p1906_p0 }
  0x1f   : > { %p1914_p9 = pnand %p1913_p7, %p1907_p1 }
  0x21   : > { %1917 = shalt.err (!%p1914_p9)
}
  0x22   : > { %s2116_s20 = smov 64   ;;  %s2117_s22 = smov 4  }
  0x23   : > { %1809 = dma.hbm_to_vmem [thread:$0]  (!%p2210_p5), %s2530_s4, 1024, %s2204_s16, [#allocation9], %s2116_s20, %s2116_s20, %s2117_s22  }
  0x24   : > { %s2554_s18 = smov (%p2215_p6, %s36_s18), 0  ;;  %s1918_s28 = scalar_lea.hbm %s2528_s2, 2048 }
  0x25   : > { %p1919_p2 = scmp.ne.s32.totalorder %s2528_s2, %s1918_s28  ;;  %p1925_p12 = scmp.lt.u32.totalorder %s1918_s28, %s2528_s2 }
  0x27   : > { %p1921_p10 = pnand %p1919_p2, %p2227_p8 }
  0x29   : > { %p1922_p11 = pneg %p1921_p10 }
  0x2b   : > { %p1927_p13 = pnand %p1925_p12, %p1922_p11 }
  0x2d   : > { %1930 = shalt.err (!%p1927_p13)
}
  0x2e   : > { %s1931_s16 = scalar_lea.vmem %s222_s21, 2048  ;;  %p1939_p4 = scmp.lt.s32.totalorder %s222_s21, %s222_s21 }
  0x2f   : > { %p1932_p6 = scmp.ne.s32.totalorder %s222_s21, %s1931_s16  ;;  %p1940_p7 = scmp.lt.s32.totalorder %s1931_s16, %s1931_s16 }
  0x31   : > { %p1934_p0 = pnand %p1932_p6, %p2227_p8  ;;  %p1941_p9 = por %p1940_p7, %p1939_p4 }
  0x33   : > { %p1935_p1 = pneg %p1934_p0 }
  0x35   : > { %p1942_p3 = pnand %p1941_p9, %p1935_p1 }
  0x37   : > { %1945 = shalt.err (!%p1942_p3)
}
  0x38   : > { %1806 = dma.hbm_to_vmem [thread:$0]  (!%p2210_p5), %s2528_s2, 2048, %s222_s21, [#allocation6], %s2116_s20, %s2116_s20, %s2117_s22  }
  0x39   : > { %s2118_s19 = smov [#allocation10]   ;;  %s1946_s26 = scalar_lea.hbm %s2532_s6, 1024 }
  0x3a   : > { %s253_s23 = sshll.u32 %s2118_s19, 4  ;;  %p1947_p3 = scmp.ne.s32.totalorder %s2532_s6, %s1946_s26  ;;  %s254_s23 = int_to_ptr.vmem [resolvable:$true] %s253_s23 }
  0x3b   : > { %p1953_p11 = scmp.lt.u32.totalorder %s1946_s26, %s2532_s6 }
  0x3c   : > { %p1949_p2 = pnand %p1947_p3, %p2227_p8 }
  0x3e   : > { %p1950_p10 = pneg %p1949_p2 }
  0x40   : > { %p1955_p12 = pnand %p1953_p11, %p1950_p10 }
  0x42   : > { %1958 = shalt.err (!%p1955_p12)
}
  0x43   : > { %s1959_s21 = scalar_lea.vmem %s254_s23, 1024  ;;  %p1967_p1 = scmp.lt.s32.totalorder %s254_s23, %s254_s23 }
  0x44   : > { %p1960_p13 = scmp.ne.s32.totalorder %s254_s23, %s1959_s21  ;;  %p1968_p4 = scmp.lt.s32.totalorder %s1959_s21, %s1959_s21 }
  0x46   : > { %p1962_p6 = pnand %p1960_p13, %p2227_p8  ;;  %p1969_p7 = por %p1968_p4, %p1967_p1 }
  0x48   : > { %p1963_p0 = pneg %p1962_p6 }
  0x4a   : > { %p1970_p9 = pnand %p1969_p7, %p1963_p0 }
  0x4c   : > { %1973 = shalt.err (!%p1970_p9)
}
  0x4d   : > { %1812 = dma.hbm_to_vmem [thread:$0]  (!%p2210_p5), %s2532_s6, 1024, %s254_s23, [#allocation9], %s2116_s20, %s2116_s20, %s2117_s22  }
  0x4e   : > { %p2547_p3 = scmp.ne.s32.totalorder %s2543_s14, 0 }
  0x4f   : > { %p2548_p8 = scmp.ne.s32.totalorder (!%p2547_p3), %s2542_s13, 0 }
  0x50   : > { %272 = sbr.rel (%p2547_p3) target bundleno = 1467 (0x5bb), region = 44 }
  0x57   : > { %2083 = dma.done.wait (%p2548_p8), [#allocation6], 2048  }
  0x58   : > { %2085 = vsyncadd (%p2548_p8), [#allocation6], 4294965248 }
  0x59   : > { %2087 = dma.done.wait (%p2548_p8), [#allocation9], 2048  }
  0x5a   : > { %2089 = vsyncadd (%p2548_p8), [#allocation9], 4294965248  ;;  %p304_p5 = scmp.lt.s32.totalorder %s2104_s30, 0  ;;  %s305_s17 = ssub.s32 0, %s2104_s30 }
  0x5b   : > { %s1435_s14 = smin.u32 %s2104_s30, %s305_s17  ;;  %p318_p2 = scmp.eq.s32.totalorder %s2104_s30, 0 }
  0x5c   : > { %s307_s27 = sand.u32 1, %s1435_s14   ;;  %s2119_s13 = smov (%p318_p2), [#allocation2 + $0x40]  }
  0x5d   : > { %s308_s20 = ssub.s32 0, %s307_s27  ;;  %323 = sbr.rel (!%p318_p2) target bundleno = 394 (0x18a), region = 60 }
  0x5e   : > { %s2556_s20 = smov (!%p304_p5, %s308_s20), %s307_s27  ;;  %s332_s23 = sshll.u32 (%p318_p2), %s2119_s13, 4  ;;  %s333_s23 = int_to_ptr.vmem [resolvable:$true] %s332_s23 }
  0x5f   : > { %p1437_p10 = scmp.lt.s32.totalorder %s2556_s20, 0  ;;  %s314_s22 = sadd.s32 2, %s2556_s20 }
  0x60   : > { %s2120_s24 = smov (%p318_p2), [#allocation4]   ;;  %s1974_s29 = scalar_lea.hbm (%p318_p2), %s2526_s0, 1024 }
  0x61   : > { %s2558_s22 = smov (!%p1437_p10, %s314_s22), %s2556_s20  ;;  %s344_s25 = sshll.u32 (%p318_p2), %s2120_s24, 4  ;;  %s2314_s25 = int_to_ptr.vmem [resolvable:$true] %s344_s25 }
  0x62   : > { %s316_s19 = ssub.s32 1, %s2558_s22  ;;  %p1975_p11 = scmp.ne.s32.totalorder (%p318_p2), %s2526_s0, %s1974_s29 }
  0x63   : > { %p1978_p12 = scmp.lt.u32.totalorder (%p318_p2), %s1974_s29, %s2526_s0 }
  0x65   : > { %p1980_p13 = pnand %p1978_p12, %p1975_p11 }
  0x67   : > { %1983 = shalt.err (!%p1980_p13)  }
  0x68   : > { %s1984_s12 = scalar_lea.vmem %s333_s23, 1024  ;;  %s2121_s17 = smov [#allocation2]  }
  0x69   : > { %p1985_p6 = scmp.ne.s32.totalorder %s333_s23, %s1984_s12  ;;  %s1986_s14 = sshll.u32 %s2121_s17, 4  ;;  %s1987_s14 = int_to_ptr.vmem [resolvable:$false] %s1986_s14 }
  0x6a   : > { %s1988_s27 = scalar_lea.vmem %s1987_s14, 2048  ;;  %p1989_p0 = scmp.lt.s32.totalorder %s333_s23, %s1987_s14 }
  0x6b   : > { %p1990_p1 = scmp.lt.s32.totalorder %s1988_s27, %s1984_s12 }
  0x6d   : > { %p1991_p4 = por %p1990_p1, %p1989_p0 }
  0x6f   : > { %p1992_p7 = pnand %p1991_p4, %p1985_p6 }
  0x71   : > { %1995 = shalt.err (!%p1992_p7)  }
  0x72   : > { %335 = dma.hbm_to_vmem [thread:$0]  %s2526_s0, 1024, %s333_s23, [#allocation3] }
  0x73   : > { %s1996_s28 = scalar_lea.hbm %s2527_s1, 1024 }
  0x74   : > { %p1997_p9 = scmp.ne.s32.totalorder %s2527_s1, %s1996_s28  ;;  %p2000_p3 = scmp.lt.u32.totalorder %s1996_s28, %s2527_s1 }
  0x76   : > { %p2002_p8 = pnand %p2000_p3, %p1997_p9 }
  0x78   : > { %2005 = shalt.err (!%p2002_p8)  }
  0x79   : > { %s2006_s10 = scalar_lea.vmem %s2314_s25, 1024  ;;  %p2011_p2 = scmp.lt.s32.totalorder %s2314_s25, %s2314_s25 }
  0x7a   : > { %p2007_p5 = scmp.ne.s32.totalorder %s2314_s25, %s2006_s10  ;;  %p2012_p10 = scmp.lt.s32.totalorder %s2006_s10, %s2006_s10 }
  0x7c   : > { %p2013_p11 = por %p2012_p10, %p2011_p2 }
  0x7e   : > { %p2014_p12 = pnand %p2013_p11, %p2007_p5 }
  0x80   : > { %2017 = shalt.err (!%p2014_p12)  }
  0x81   : > { %347 = dma.hbm_to_vmem [thread:$0]  %s2527_s1, 1024, %s2314_s25, [#allocation3 + $0x1] }
  0x82   : > { %2090 = dma.done.wait [#allocation3], 1024 }
  0x83   : > { %2091 = vsyncadd [#allocation3], 4294966272  ;;  %v1858_v0 = vld [vmem:[#allocation5] sm:$0xff]   ;;  %v1859_v1 = vld [vmem:[#allocation5 + $0x8] sm:$0xff]  }
  0x84   : > { %1575 = vmatprep.subr.bf16.mxu0 %v1858_v0  ;;  %1735 = vmatprep.subr.bf16.mxu1 %v1858_v0  ;;  %v1860_v2 = vld [vmem:[#allocation5 + $0x10] sm:$0xff]   ;;  %v1861_v3 = vld [vmem:[#allocation5 + $0x18] sm:$0xff]   ;;  %v355_v4 = vld [vmem:[#allocation2 + $0x40] sm:$0xff] }
  0x85   : > { %1576 = vmatpush3.bf16.msra.mxu0 %v1858_v0  ;;  %1743 = vmatpush3.bf16.msra.mxu1 %v1858_v0  ;;  %v359_v5 = vld [vmem:[#allocation2 + $0x60] sm:$0xff]  ;;  %v1863_v7 = vld [vmem:[#allocation5 + $0x28] sm:$0xff]   ;;  %v1864_v8 = vld [vmem:[#allocation5 + $0x30] sm:$0xff]  }
  0x86   : > { %1577 = vmatprep.subr.bf16.mxu0 %v1859_v1  ;;  %1736 = vmatprep.subr.bf16.mxu1 %v1859_v1  ;;  %v1862_v6 = vld [vmem:[#allocation5 + $0x20] sm:$0xff]   ;;  %v1865_v9 = vld [vmem:[#allocation5 + $0x38] sm:$0xff]   ;;  %v356_v10 = vld [vmem:[#allocation2 + $0x48] sm:$0xff] }
  0x87   : > { %1591 = vmatprep.mubr.bf16.mxu0 %v355_v4  ;;  %1599 = vmatprep.mubr.bf16.mxu1 %v359_v5  ;;  %v360_v11 = vld [vmem:[#allocation2 + $0x68] sm:$0xff]  ;;  %v357_v12 = vld [vmem:[#allocation2 + $0x50] sm:$0xff]  ;;  %v358_v14 = vld [vmem:[#allocation2 + $0x58] sm:$0xff] }
  0x88   : > { %v361_v13 = vld [vmem:[#allocation2 + $0x70] sm:$0xff]  ;;  %v362_v15 = vld [vmem:[#allocation2 + $0x78] sm:$0xff]  ;;  %v1439_v17 = vld [vmem:[%s2529_s3] ss:$0 sm:$0xff] }
  0x89   : > { %1578 = vmatpush3.bf16.msra.mxu0 %v1859_v1  ;;  %1744 = vmatpush3.bf16.msra.mxu1 %v1859_v1 }
  0x8a   : > { %1579 = vmatprep.subr.bf16.mxu0 %v1860_v2  ;;  %1737 = vmatprep.subr.bf16.mxu1 %v1860_v2 }
  0x8d   : > { %1580 = vmatpush3.bf16.msra.mxu0 %v1860_v2  ;;  %1745 = vmatpush3.bf16.msra.mxu1 %v1860_v2 }
  0x8e   : > { %1581 = vmatprep.subr.bf16.mxu0 %v1861_v3  ;;  %1738 = vmatprep.subr.bf16.mxu1 %v1861_v3 }
  0x91   : > { %1582 = vmatpush3.bf16.msra.mxu0 %v1861_v3  ;;  %1746 = vmatpush3.bf16.msra.mxu1 %v1861_v3 }
  0x92   : > { %1583 = vmatprep.subr.bf16.mxu0 %v1862_v6  ;;  %1739 = vmatprep.subr.bf16.mxu1 %v1862_v6 }
  0x95   : > { %1584 = vmatpush3.bf16.msra.mxu0 %v1862_v6  ;;  %1747 = vmatpush3.bf16.msra.mxu1 %v1862_v6 }
  0x96   : > { %1585 = vmatprep.subr.bf16.mxu0 %v1863_v7  ;;  %1740 = vmatprep.subr.bf16.mxu1 %v1863_v7 }
  0x99   : > { %1586 = vmatpush3.bf16.msra.mxu0 %v1863_v7  ;;  %1748 = vmatpush3.bf16.msra.mxu1 %v1863_v7 }
  0x9a   : > { %1587 = vmatprep.subr.bf16.mxu0 %v1864_v8  ;;  %1741 = vmatprep.subr.bf16.mxu1 %v1864_v8 }
  0x9d   : > { %1588 = vmatpush3.bf16.msra.mxu0 %v1864_v8  ;;  %1749 = vmatpush3.bf16.msra.mxu1 %v1864_v8 }
  0x9e   : > { %1589 = vmatprep.subr.bf16.mxu0 %v1865_v9  ;;  %1742 = vmatprep.subr.bf16.mxu1 %v1865_v9 }
  0xa1   : > { %1590 = vmatpush3.bf16.msra.mxu0 %v1865_v9  ;;  %1750 = vmatpush3.bf16.msra.mxu1 %v1865_v9 }
  0xa4   : > { %1592 = vmatmul.mubr.bf16.vlgmr.msra.gmra.mrb[0].mxu0 %v356_v10  ;;  %1600 = vmatmul.mubr.bf16.vlgmr.msra.gmra.mrb[0].mxu1 %v360_v11 }
  0xa5   : > { %1595 = vmatprep.mubr.bf16.mxu0 %v357_v12  ;;  %1603 = vmatprep.mubr.bf16.mxu1 %v361_v13 }
  0xac   : > { %1596 = vmatmul.mubr.bf16.gmra.mrb[4].mxu0 %v358_v14  ;;  %1604 = vmatmul.mubr.bf16.gmra.mrb[4].mxu1 %v362_v15 }
 0x177   : > { %v1593_v16 = vpop.f32.mrb[0].mxu0  ;;  %v1601_v18 = vpop.f32.mrb[0].mxu1 }
 0x178   : > { %v468_v19 = vpop.f32.mrb[1].mxu0  ;;  %v500_v20 = vpop.f32.mrb[1].mxu1  ;;  %v477_v23 = vadd.f32 %v1593_v16, %v1439_v17  ;;  %v509_v24 = vadd.f32 %v1601_v18, %v1439_v17 }
 0x179   : > { %v1594_v21 = vpop.f32.mrb[2].mxu0  ;;  %v1602_v22 = vpop.f32.mrb[2].mxu1  ;;  %v469_v29 = vadd.f32 %v1439_v17, %v468_v19  ;;  %v501_v30 = vadd.f32 %v1439_v17, %v500_v20 }
 0x17a   : > { %v480_v25 = vadd.f32 %v1594_v21, %v1439_v17  ;;  %v512_v26 = vadd.f32 %v1602_v22, %v1439_v17  ;;  %v471_v27 = vpop.f32.mrb[3].mxu0  ;;  %v503_v28 = vpop.f32.mrb[3].mxu1 }
 0x17b   : > { %v472_v31 = vadd.f32 %v1439_v17, %v471_v27  ;;  %v504_v32 = vadd.f32 %v1439_v17, %v503_v28 }
 0x17c   : > { %v532_v33 = vpack.c.bf16 %v480_v25, %v477_v23  ;;  %v536_v34 = vpack.c.bf16 %v512_v26, %v509_v24 }
 0x17d   : > { %v531_v35 = vpack.c.bf16 %v472_v31, %v469_v29  ;;  %v535_v36 = vpack.c.bf16 %v504_v32, %v501_v30 }
 0x17e   : > { %540 = vst [vmem:[#allocation2 + $0x8] sm:$0xff] %v532_v33  ;;  %544 = vst [vmem:[#allocation2 + $0x28] sm:$0xff] %v536_v34 }
 0x17f   : > { %539 = vst [vmem:[#allocation2] sm:$0xff] %v531_v35  ;;  %543 = vst [vmem:[#allocation2 + $0x20] sm:$0xff] %v535_v36  ;;  %v1597_v37 = vpop.f32.mrb[4].mxu0  ;;  %v1605_v38 = vpop.f32.mrb[4].mxu1 }
 0x180   : > { %v484_v39 = vpop.f32.mrb[5].mxu0  ;;  %v516_v40 = vpop.f32.mrb[5].mxu1  ;;  %v493_v43 = vadd.f32 %v1597_v37, %v1439_v17  ;;  %v525_v44 = vadd.f32 %v1605_v38, %v1439_v17 }
 0x181   : > { %v1598_v41 = vpop.f32.mrb[6].mxu0  ;;  %v1606_v42 = vpop.f32.mrb[6].mxu1  ;;  %v485_v49 = vadd.f32 %v1439_v17, %v484_v39  ;;  %v517_v50 = vadd.f32 %v1439_v17, %v516_v40 }
 0x182   : > { %v496_v45 = vadd.f32 %v1598_v41, %v1439_v17  ;;  %v528_v46 = vadd.f32 %v1606_v42, %v1439_v17  ;;  %v487_v47 = vpop.f32.mrb[7].mxu0  ;;  %v519_v48 = vpop.f32.mrb[7].mxu1 }
 0x183   : > { %v488_v51 = vadd.f32 %v1439_v17, %v487_v47  ;;  %v520_v52 = vadd.f32 %v1439_v17, %v519_v48 }
 0x184   : > { %v534_v53 = vpack.c.bf16 %v496_v45, %v493_v43  ;;  %v538_v54 = vpack.c.bf16 %v528_v46, %v525_v44 }
 0x185   : > { %v533_v55 = vpack.c.bf16 %v488_v51, %v485_v49  ;;  %v537_v56 = vpack.c.bf16 %v520_v52, %v517_v50 }
 0x186   : > { %542 = vst [vmem:[#allocation2 + $0x18] sm:$0xff] %v534_v53  ;;  %546 = vst [vmem:[#allocation2 + $0x38] sm:$0xff] %v538_v54 }
 0x187   : > { %541 = vst [vmem:[#allocation2 + $0x10] sm:$0xff] %v533_v55  ;;  %545 = vst [vmem:[#allocation2 + $0x30] sm:$0xff] %v537_v56 }
 0x188   : > { %2092 = dma.done.wait [#allocation3 + $0x1], 1024 }
 0x189   : > { %2093 = vsyncadd [#allocation3 + $0x1], 4294966272 }
 0x18a PF: > { %s1492_s14 = sshll.u32 %s2558_s22, 6  ;;  %v553_v57 = vld [vmem:[#allocation4] sm:$0xff]  ;;  %v554_v3 = vld [vmem:[#allocation4 + $0x8] sm:$0xff]  ;;  %v555_v5 = vld [vmem:[#allocation4 + $0x10] sm:$0xff]  ;;  %p1450_p13 = scmp.eq.s32.totalorder %s2104_s30, 1 }
 0x18b   : > { %v557_v58 = vld [vmem:[#allocation4 + $0x20] sm:$0xff]  ;;  %1623 = vmatprep.mubr.bf16.mxu0 %v553_v57  ;;  %s2349_s27 = scalar_lea.vmem [#allocation2], %s1492_s14  ;;  %v558_v4 = vld [vmem:[#allocation4 + $0x28] sm:$0xff]  ;;  %v559_v6 = vld [vmem:[#allocation4 + $0x30] sm:$0xff]  ;;  %s697_s20 = sadd.s32 (!%p1450_p13), 1, %s2104_s30 }
 0x18c   : > { %1631 = vmatprep.mubr.bf16.mxu1 %v557_v58  ;;  %v556_v7 = vld [vmem:[#allocation4 + $0x18] sm:$0xff]  ;;  %p698_p6 = scmp.lt.s32.totalorder (!%p1450_p13), %s697_s20, 1  ;;  %s1494_s15 = sshll.u32 (!%p1450_p13), %s316_s19, 6 }
 0x18d   : > { %v560_v8 = vld [vmem:[#allocation4 + $0x38] sm:$0xff]  ;;  %s883_s16 = scalar_lea.vmem (!%p1450_p13), [#allocation2], %s1494_s15 }
 0x18e   : > { %v564_v59 = vld [vmem:[%s2349_s27] sm:$0xff]  ;;  %v565_v60 = vld [vmem:[%s2349_s27 + $0x8] sm:$0xff]  ;;  %v566_v61 = vld [vmem:[%s2349_s27 + $0x10] sm:$0xff] }
 0x18f   : > { %1607 = vmatprep.subr.bf16.mxu0 %v564_v59  ;;  %1751 = vmatprep.subr.bf16.mxu1 %v564_v59  ;;  %v567_v62 = vld [vmem:[%s2349_s27 + $0x18] sm:$0xff]  ;;  %v568_v63 = vld [vmem:[%s2349_s27 + $0x20] sm:$0xff]  ;;  %v569_v0 = vld [vmem:[%s2349_s27 + $0x28] sm:$0xff] }
 0x190   : > { %1608 = vmatpush3.bf16.msra.mxu0 %v564_v59  ;;  %1759 = vmatpush3.bf16.msra.mxu1 %v564_v59  ;;  %v570_v1 = vld [vmem:[%s2349_s27 + $0x30] sm:$0xff]  ;;  %v571_v2 = vld [vmem:[%s2349_s27 + $0x38] sm:$0xff] }
 0x191   : > { %1609 = vmatprep.subr.bf16.mxu0 %v565_v60  ;;  %1752 = vmatprep.subr.bf16.mxu1 %v565_v60 }
 0x194   : > { %1610 = vmatpush3.bf16.msra.mxu0 %v565_v60  ;;  %1760 = vmatpush3.bf16.msra.mxu1 %v565_v60 }
 0x195   : > { %1611 = vmatprep.subr.bf16.mxu0 %v566_v61  ;;  %1753 = vmatprep.subr.bf16.mxu1 %v566_v61 }
 0x198   : > { %1612 = vmatpush3.bf16.msra.mxu0 %v566_v61  ;;  %1761 = vmatpush3.bf16.msra.mxu1 %v566_v61 }
 0x199   : > { %1613 = vmatprep.subr.bf16.mxu0 %v567_v62  ;;  %1754 = vmatprep.subr.bf16.mxu1 %v567_v62 }
 0x19c   : > { %1614 = vmatpush3.bf16.msra.mxu0 %v567_v62  ;;  %1762 = vmatpush3.bf16.msra.mxu1 %v567_v62 }
 0x19d   : > { %1615 = vmatprep.subr.bf16.mxu0 %v568_v63  ;;  %1755 = vmatprep.subr.bf16.mxu1 %v568_v63 }
 0x1a0   : > { %1616 = vmatpush3.bf16.msra.mxu0 %v568_v63  ;;  %1763 = vmatpush3.bf16.msra.mxu1 %v568_v63 }
 0x1a1   : > { %1617 = vmatprep.subr.bf16.mxu0 %v569_v0  ;;  %1756 = vmatprep.subr.bf16.mxu1 %v569_v0 }
 0x1a4   : > { %1618 = vmatpush3.bf16.msra.mxu0 %v569_v0  ;;  %1764 = vmatpush3.bf16.msra.mxu1 %v569_v0 }
 0x1a5   : > { %1619 = vmatprep.subr.bf16.mxu0 %v570_v1  ;;  %1757 = vmatprep.subr.bf16.mxu1 %v570_v1 }
 0x1a8   : > { %1620 = vmatpush3.bf16.msra.mxu0 %v570_v1  ;;  %1765 = vmatpush3.bf16.msra.mxu1 %v570_v1 }
 0x1a9   : > { %1621 = vmatprep.subr.bf16.mxu0 %v571_v2  ;;  %1758 = vmatprep.subr.bf16.mxu1 %v571_v2 }
 0x1ac   : > { %1622 = vmatpush3.bf16.msra.mxu0 %v571_v2  ;;  %1766 = vmatpush3.bf16.msra.mxu1 %v571_v2 }
 0x1af   : > { %1624 = vmatmul.mubr.bf16.vlgmr.msra.gmra.mrb[0].mxu0 %v554_v3  ;;  %1632 = vmatmul.mubr.bf16.vlgmr.msra.gmra.mrb[0].mxu1 %v558_v4 }
 0x1b0   : > { %1627 = vmatprep.mubr.bf16.mxu0 %v555_v5  ;;  %1635 = vmatprep.mubr.bf16.mxu1 %v559_v6 }
 0x1b7   : > { %1628 = vmatmul.mubr.bf16.gmra.mrb[4].mxu0 %v556_v7  ;;  %1636 = vmatmul.mubr.bf16.gmra.mrb[4].mxu1 %v560_v8 }
 0x282   : > { %v2359_v9 = vpop.f32.mrb[0].mxu0  ;;  %v2361_v10 = vpop.f32.mrb[0].mxu1 }
 0x283   : > { %v2363_v11 = vpop.f32.mrb[1].mxu0  ;;  %v2365_v12 = vpop.f32.mrb[1].mxu1  ;;  %v675_v39 = vmax.f32 (!%p1450_p13), %v2359_v9, 0.0  ;;  %v683_v41 = vmax.f32 (!%p1450_p13), %v2361_v10, 0.0 }
 0x284   : > { %v2367_v13 = vpop.f32.mrb[2].mxu0  ;;  %v2369_v14 = vpop.f32.mrb[2].mxu1  ;;  %v673_v25 = vmax.f32 (!%p1450_p13), %v2363_v11, 0.0  ;;  %v681_v27 = vmax.f32 (!%p1450_p13), %v2365_v12, 0.0 }
 0x285   : > { %v2371_v15 = vpop.f32.mrb[3].mxu0  ;;  %v2373_v16 = vpop.f32.mrb[3].mxu1  ;;  %v676_v40 = vmax.f32 (!%p1450_p13), %v2367_v13, 0.0  ;;  %v684_v42 = vmax.f32 (!%p1450_p13), %v2369_v14, 0.0 }
 0x286   : > { %v674_v26 = vmax.f32 (!%p1450_p13), %v2371_v15, 0.0  ;;  %v682_v28 = vmax.f32 (!%p1450_p13), %v2373_v16, 0.0 }
 0x287   : > { %672 = sbr.rel (%p1450_p13) target bundleno = 918 (0x396), region = 72  ;;  %v690_v47 = vpack.c.bf16 (!%p1450_p13), %v676_v40, %v675_v39  ;;  %v694_v48 = vpack.c.bf16 (!%p1450_p13), %v684_v42, %v683_v41 }
 0x288   : > { %v689_v29 = vpack.c.bf16 (!%p1450_p13), %v674_v26, %v673_v25  ;;  %v693_v30 = vpack.c.bf16 (!%p1450_p13), %v682_v28, %v681_v27 }
 0x28a   : > { %v2375_v17 = vpop.f32.mrb[4].mxu0  ;;  %v2377_v18 = vpop.f32.mrb[4].mxu1  ;;  %1655 = vmatprep.mubr.bf16.mxu0 (!%p1450_p13), %v689_v29  ;;  %1663 = vmatprep.mubr.bf16.mxu1 (!%p1450_p13), %v693_v30 }
 0x28b   : > { %v2379_v19 = vpop.f32.mrb[5].mxu0  ;;  %v2381_v20 = vpop.f32.mrb[5].mxu1  ;;  %v679_v51 = vmax.f32 (!%p1450_p13), %v2375_v17, 0.0  ;;  %v687_v53 = vmax.f32 (!%p1450_p13), %v2377_v18, 0.0 }
 0x28c   : > { %v2383_v21 = vpop.f32.mrb[6].mxu0  ;;  %v2385_v22 = vpop.f32.mrb[6].mxu1  ;;  %v677_v43 = vmax.f32 (!%p1450_p13), %v2379_v19, 0.0  ;;  %v685_v45 = vmax.f32 (!%p1450_p13), %v2381_v20, 0.0 }
 0x28d   : > { %v2387_v23 = vpop.f32.mrb[7].mxu0  ;;  %v2389_v24 = vpop.f32.mrb[7].mxu1  ;;  %v680_v52 = vmax.f32 (!%p1450_p13), %v2383_v21, 0.0  ;;  %v688_v54 = vmax.f32 (!%p1450_p13), %v2385_v22, 0.0 }
 0x28e   : > { %s2560_s20 = smov (!%p698_p6, %s697_s20), 1  ;;  %v678_v44 = vmax.f32 %v2387_v23, 0.0  ;;  %v686_v46 = vmax.f32 %v2389_v24, 0.0 }
 0x28f   : > { %s1493_s13 = sshll.u32 %s2560_s20, 6  ;;  %v692_v55 = vpack.c.bf16 %v680_v52, %v679_v51  ;;  %v696_v56 = vpack.c.bf16 %v688_v54, %v687_v53  ;;  %s719_s29 = scalar_lea.vmem %s2529_s3, %s2560_s20 }
 0x290   : > { %s2400_s24 = scalar_lea.vmem [#allocation5], %s1493_s13  ;;  %v691_v49 = vpack.c.bf16 %v678_v44, %v677_v43  ;;  %v695_v50 = vpack.c.bf16 %v686_v46, %v685_v45  ;;  %v1453_v57 = vld [vmem:[%s719_s29] ss:$0 sm:$0xff] }
 0x291   : > { %v1866_v31 = vld [vmem:[%s2400_s24] sm:$0xff]   ;;  %v1867_v32 = vld [vmem:[%s2400_s24 + $0x8] sm:$0xff]   ;;  %v1868_v33 = vld [vmem:[%s2400_s24 + $0x10] sm:$0xff]  }
 0x292   : > { %1639 = vmatprep.subr.bf16.mxu0 %v1866_v31  ;;  %1767 = vmatprep.subr.bf16.mxu1 %v1866_v31  ;;  %v1869_v34 = vld [vmem:[%s2400_s24 + $0x18] sm:$0xff]   ;;  %v1870_v35 = vld [vmem:[%s2400_s24 + $0x20] sm:$0xff]   ;;  %v1871_v36 = vld [vmem:[%s2400_s24 + $0x28] sm:$0xff]  }
 0x293   : > { %1640 = vmatpush3.bf16.msra.mxu0 %v1866_v31  ;;  %1775 = vmatpush3.bf16.msra.mxu1 %v1866_v31  ;;  %v1872_v37 = vld [vmem:[%s2400_s24 + $0x30] sm:$0xff]   ;;  %v1873_v38 = vld [vmem:[%s2400_s24 + $0x38] sm:$0xff]  }
 0x294   : > { %1641 = vmatprep.subr.bf16.mxu0 %v1867_v32  ;;  %1768 = vmatprep.subr.bf16.mxu1 %v1867_v32 }
 0x297   : > { %1642 = vmatpush3.bf16.msra.mxu0 %v1867_v32  ;;  %1776 = vmatpush3.bf16.msra.mxu1 %v1867_v32 }
 0x298   : > { %1643 = vmatprep.subr.bf16.mxu0 %v1868_v33  ;;  %1769 = vmatprep.subr.bf16.mxu1 %v1868_v33 }
 0x29b   : > { %1644 = vmatpush3.bf16.msra.mxu0 %v1868_v33  ;;  %1777 = vmatpush3.bf16.msra.mxu1 %v1868_v33 }
 0x29c   : > { %1645 = vmatprep.subr.bf16.mxu0 %v1869_v34  ;;  %1770 = vmatprep.subr.bf16.mxu1 %v1869_v34 }
 0x29f   : > { %1646 = vmatpush3.bf16.msra.mxu0 %v1869_v34  ;;  %1778 = vmatpush3.bf16.msra.mxu1 %v1869_v34 }
 0x2a0   : > { %1647 = vmatprep.subr.bf16.mxu0 %v1870_v35  ;;  %1771 = vmatprep.subr.bf16.mxu1 %v1870_v35 }
 0x2a3   : > { %1648 = vmatpush3.bf16.msra.mxu0 %v1870_v35  ;;  %1779 = vmatpush3.bf16.msra.mxu1 %v1870_v35 }
 0x2a4   : > { %1649 = vmatprep.subr.bf16.mxu0 %v1871_v36  ;;  %1772 = vmatprep.subr.bf16.mxu1 %v1871_v36 }
 0x2a7   : > { %1650 = vmatpush3.bf16.msra.mxu0 %v1871_v36  ;;  %1780 = vmatpush3.bf16.msra.mxu1 %v1871_v36 }
 0x2a8   : > { %1651 = vmatprep.subr.bf16.mxu0 %v1872_v37  ;;  %1773 = vmatprep.subr.bf16.mxu1 %v1872_v37 }
 0x2ab   : > { %1652 = vmatpush3.bf16.msra.mxu0 %v1872_v37  ;;  %1781 = vmatpush3.bf16.msra.mxu1 %v1872_v37 }
 0x2ac   : > { %1653 = vmatprep.subr.bf16.mxu0 %v1873_v38  ;;  %1774 = vmatprep.subr.bf16.mxu1 %v1873_v38 }
 0x2af   : > { %1654 = vmatpush3.bf16.msra.mxu0 %v1873_v38  ;;  %1782 = vmatpush3.bf16.msra.mxu1 %v1873_v38 }
 0x2b2   : > { %1656 = vmatmul.mubr.bf16.vlgmr.msra.gmra.mrb[0].mxu0 %v690_v47  ;;  %1664 = vmatmul.mubr.bf16.vlgmr.msra.gmra.mrb[0].mxu1 %v694_v48 }
 0x2b3   : > { %1659 = vmatprep.mubr.bf16.mxu0 %v691_v49  ;;  %1667 = vmatprep.mubr.bf16.mxu1 %v695_v50 }
 0x2ba   : > { %1660 = vmatmul.mubr.bf16.gmra.mrb[4].mxu0 %v692_v55  ;;  %1668 = vmatmul.mubr.bf16.gmra.mrb[4].mxu1 %v696_v56 }
 0x385   : > { %v1657_v58 = vpop.f32.mrb[0].mxu0  ;;  %v1665_v59 = vpop.f32.mrb[0].mxu1 }
 0x386   : > { %v818_v60 = vadd.f32 %v1657_v58, %v1453_v57  ;;  %v850_v61 = vadd.f32 %v1665_v59, %v1453_v57  ;;  %v809_v62 = vpop.f32.mrb[1].mxu0  ;;  %v841_v63 = vpop.f32.mrb[1].mxu1 }
 0x387   : > { %v810_v0 = vadd.f32 %v1453_v57, %v809_v62  ;;  %v842_v1 = vadd.f32 %v1453_v57, %v841_v63  ;;  %v1658_v2 = vpop.f32.mrb[2].mxu0  ;;  %v1666_v3 = vpop.f32.mrb[2].mxu1 }
 0x388   : > { %v821_v4 = vadd.f32 %v1658_v2, %v1453_v57  ;;  %v853_v5 = vadd.f32 %v1666_v3, %v1453_v57  ;;  %v812_v6 = vpop.f32.mrb[3].mxu0  ;;  %v844_v7 = vpop.f32.mrb[3].mxu1 }
 0x389   : > { %v813_v8 = vadd.f32 %v1453_v57, %v812_v6  ;;  %v845_v25 = vadd.f32 %v1453_v57, %v844_v7 }
 0x38a   : > { %v873_v26 = vpack.c.bf16 %v821_v4, %v818_v60  ;;  %v877_v27 = vpack.c.bf16 %v853_v5, %v850_v61 }
 0x38b   : > { %v872_v28 = vpack.c.bf16 %v813_v8, %v810_v0  ;;  %v876_v29 = vpack.c.bf16 %v845_v25, %v842_v1 }
 0x38c   : > { %885 = vst [vmem:[%s883_s16 + $0x8] sm:$0xff] %v873_v26  ;;  %889 = vst [vmem:[%s883_s16 + $0x28] sm:$0xff] %v877_v27 }
 0x38d   : > { %884 = vst [vmem:[%s883_s16] sm:$0xff] %v872_v28  ;;  %888 = vst [vmem:[%s883_s16 + $0x20] sm:$0xff] %v876_v29  ;;  %v1661_v30 = vpop.f32.mrb[4].mxu0  ;;  %v1669_v31 = vpop.f32.mrb[4].mxu1 }
 0x38e   : > { %v834_v32 = vadd.f32 %v1661_v30, %v1453_v57  ;;  %v866_v33 = vadd.f32 %v1669_v31, %v1453_v57  ;;  %v825_v34 = vpop.f32.mrb[5].mxu0  ;;  %v857_v35 = vpop.f32.mrb[5].mxu1 }
 0x38f   : > { %v826_v36 = vadd.f32 %v1453_v57, %v825_v34  ;;  %v858_v37 = vadd.f32 %v1453_v57, %v857_v35  ;;  %v1662_v38 = vpop.f32.mrb[6].mxu0  ;;  %v1670_v39 = vpop.f32.mrb[6].mxu1 }
 0x390   : > { %v837_v40 = vadd.f32 %v1662_v38, %v1453_v57  ;;  %v869_v41 = vadd.f32 %v1670_v39, %v1453_v57  ;;  %v828_v42 = vpop.f32.mrb[7].mxu0  ;;  %v860_v43 = vpop.f32.mrb[7].mxu1 }
 0x391   : > { %v829_v44 = vadd.f32 %v1453_v57, %v828_v42  ;;  %v861_v45 = vadd.f32 %v1453_v57, %v860_v43 }
 0x392   : > { %v875_v46 = vpack.c.bf16 %v837_v40, %v834_v32  ;;  %v879_v47 = vpack.c.bf16 %v869_v41, %v866_v33 }
 0x393   : > { %v874_v48 = vpack.c.bf16 %v829_v44, %v826_v36  ;;  %v878_v49 = vpack.c.bf16 %v861_v45, %v858_v37 }
 0x394   : > { %887 = vst [vmem:[%s883_s16 + $0x18] sm:$0xff] %v875_v46  ;;  %891 = vst [vmem:[%s883_s16 + $0x38] sm:$0xff] %v879_v47 }
 0x395   : > { %886 = vst [vmem:[%s883_s16 + $0x10] sm:$0xff] %v874_v48  ;;  %890 = vst [vmem:[%s883_s16 + $0x30] sm:$0xff] %v878_v49 }
 0x396 PF: > { %p1464_p0 = scmp.ne.s32.totalorder %s2104_s30, 1 }
 0x397   : > { %896 = vst [vmem:[#allocation11] sm:$0xff] (!%p1464_p0), %v2363_v11  ;;  %897 = vst [vmem:[#allocation11 + $0x8] sm:$0xff] (!%p1464_p0), %v2371_v15  ;;  %v1874_v50 = vld [vmem:[#allocation8] sm:$0xff] (!%p1464_p0)   ;;  %v912_v51 = vpack.c.bf16 (!%p1464_p0), %v2371_v15, %v2363_v11  ;;  %v1875_v52 = vld [vmem:[#allocation8 + $0x8] sm:$0xff] (!%p1464_p0)   ;;  %v913_v63 = vpack.c.bf16 (!%p1464_p0), %v2367_v13, %v2359_v9  ;;  %v914_v0 = vpack.c.bf16 (!%p1464_p0), %v2387_v23, %v2379_v19 }
 0x398   : > { %894 = sbr.rel (%p1464_p0) target bundleno = 1416 (0x588), region = 76  ;;  %898 = vst [vmem:[#allocation11 + $0x10] sm:$0xff] (!%p1464_p0), %v2359_v9  ;;  %899 = vst [vmem:[#allocation11 + $0x18] sm:$0xff] (!%p1464_p0), %v2367_v13  ;;  %1671 = vmatprep.subr.bf16.mxu0 (!%p1464_p0), %v1874_v50  ;;  %v1876_v53 = vld [vmem:[#allocation8 + $0x10] sm:$0xff] (!%p1464_p0)   ;;  %v1877_v54 = vld [vmem:[#allocation8 + $0x18] sm:$0xff] (!%p1464_p0)   ;;  %v915_v1 = vpack.c.bf16 (!%p1464_p0), %v2383_v21, %v2375_v17  ;;  %v916_v2 = vpack.c.bf16 (!%p1464_p0), %v2373_v16, %v2365_v12  ;;  %v917_v3 = vpack.c.bf16 (!%p1464_p0), %v2369_v14, %v2361_v10 }
 0x399   : > { %900 = vst [vmem:[#allocation11 + $0x20] sm:$0xff] (!%p1464_p0), %v2379_v19  ;;  %901 = vst [vmem:[#allocation11 + $0x28] sm:$0xff] (!%p1464_p0), %v2387_v23  ;;  %1687 = vmatprep.mubr.bf16.mxu0 (!%p1464_p0), %v912_v51  ;;  %1672 = vmatpush3.bf16.msra.mxu0 (!%p1464_p0), %v1874_v50  ;;  %v1882_v55 = vld [vmem:[#allocation10] sm:$0xff] (!%p1464_p0)   ;;  %v1883_v56 = vld [vmem:[#allocation10 + $0x8] sm:$0xff] (!%p1464_p0)   ;;  %v918_v9 = vpack.c.bf16 (!%p1464_p0), %v2389_v24, %v2381_v20  ;;  %v919_v13 = vpack.c.bf16 (!%p1464_p0), %v2385_v22, %v2377_v18 }
 0x39a   : > { %902 = vst [vmem:[#allocation11 + $0x30] sm:$0xff] (!%p1464_p0), %v2375_v17  ;;  %903 = vst [vmem:[#allocation11 + $0x38] sm:$0xff] (!%p1464_p0), %v2383_v21  ;;  %1673 = vmatprep.subr.bf16.mxu0 (!%p1464_p0), %v1875_v52  ;;  %1703 = vmatprep.subr.bf16.mxu1 (!%p1464_p0), %v1882_v55  ;;  %v1878_v57 = vld [vmem:[#allocation8 + $0x20] sm:$0xff] (!%p1464_p0)   ;;  %v1884_v58 = vld [vmem:[#allocation10 + $0x10] sm:$0xff] (!%p1464_p0)  }
 0x39b   : > { %904 = vst [vmem:[#allocation11 + $0x40] sm:$0xff] (!%p1464_p0), %v2365_v12  ;;  %905 = vst [vmem:[#allocation11 + $0x48] sm:$0xff] (!%p1464_p0), %v2373_v16  ;;  %1704 = vmatpush3.bf16.msra.mxu1 (!%p1464_p0), %v1882_v55  ;;  %v1879_v11 = vld [vmem:[#allocation8 + $0x28] sm:$0xff] (!%p1464_p0)   ;;  %v1885_v15 = vld [vmem:[#allocation10 + $0x18] sm:$0xff] (!%p1464_p0)  }
 0x39c   : > { %906 = vst [vmem:[#allocation11 + $0x50] sm:$0xff] (!%p1464_p0), %v2361_v10  ;;  %907 = vst [vmem:[#allocation11 + $0x58] sm:$0xff] (!%p1464_p0), %v2369_v14  ;;  %1705 = vmatprep.subr.bf16.mxu1 (!%p1464_p0), %v1883_v56  ;;  %v1880_v59 = vld [vmem:[#allocation8 + $0x30] sm:$0xff] (!%p1464_p0)   ;;  %v1886_v60 = vld [vmem:[#allocation10 + $0x20] sm:$0xff] (!%p1464_p0)  }
 0x39d   : > { %908 = vst [vmem:[#allocation11 + $0x60] sm:$0xff] (!%p1464_p0), %v2381_v20  ;;  %909 = vst [vmem:[#allocation11 + $0x68] sm:$0xff] (!%p1464_p0), %v2389_v24  ;;  %1674 = vmatpush3.bf16.msra.mxu0 (!%p1464_p0), %v1875_v52  ;;  %v1881_v61 = vld [vmem:[#allocation8 + $0x38] sm:$0xff] (!%p1464_p0)   ;;  %v1887_v62 = vld [vmem:[#allocation10 + $0x28] sm:$0xff] (!%p1464_p0)  }
 0x39e   : > { %910 = vst [vmem:[#allocation11 + $0x70] sm:$0xff] (!%p1464_p0), %v2377_v18  ;;  %911 = vst [vmem:[#allocation11 + $0x78] sm:$0xff] (!%p1464_p0), %v2385_v22  ;;  %1675 = vmatprep.subr.bf16.mxu0 (!%p1464_p0), %v1876_v53  ;;  %v1888_v19 = vld [vmem:[#allocation10 + $0x30] sm:$0xff] (!%p1464_p0)   ;;  %v1889_v17 = vld [vmem:[#allocation10 + $0x38] sm:$0xff] (!%p1464_p0)  }
 0x39f   : > { %1706 = vmatpush3.bf16.msra.mxu1 %v1883_v56  ;;  %v1465_v12 = vld [vmem:[%s2531_s5] ss:$0 sm:$0xff] }
 0x3a0   : > { %1707 = vmatprep.subr.bf16.mxu1 %v1884_v58 }
 0x3a1   : > { %1676 = vmatpush3.bf16.msra.mxu0 %v1876_v53 }
 0x3a2   : > { %1677 = vmatprep.subr.bf16.mxu0 %v1877_v54 }
 0x3a3   : > { %1708 = vmatpush3.bf16.msra.mxu1 %v1884_v58 }
 0x3a4   : > { %1709 = vmatprep.subr.bf16.mxu1 %v1885_v15 }
 0x3a5   : > { %1678 = vmatpush3.bf16.msra.mxu0 %v1877_v54 }
 0x3a6   : > { %1679 = vmatprep.subr.bf16.mxu0 %v1878_v57 }
 0x3a7   : > { %1710 = vmatpush3.bf16.msra.mxu1 %v1885_v15 }
 0x3a8   : > { %1711 = vmatprep.subr.bf16.mxu1 %v1886_v60 }
 0x3a9   : > { %1680 = vmatpush3.bf16.msra.mxu0 %v1878_v57 }
 0x3aa   : > { %1681 = vmatprep.subr.bf16.mxu0 %v1879_v11 }
 0x3ab   : > { %1712 = vmatpush3.bf16.msra.mxu1 %v1886_v60 }
 0x3ac   : > { %1713 = vmatprep.subr.bf16.mxu1 %v1887_v62 }
 0x3ad   : > { %1682 = vmatpush3.bf16.msra.mxu0 %v1879_v11 }
 0x3ae   : > { %1683 = vmatprep.subr.bf16.mxu0 %v1880_v59 }
 0x3af   : > { %1714 = vmatpush3.bf16.msra.mxu1 %v1887_v62 }
 0x3b0   : > { %1715 = vmatprep.subr.bf16.mxu1 %v1888_v19 }
 0x3b1   : > { %1684 = vmatpush3.bf16.msra.mxu0 %v1880_v59 }
 0x3b2   : > { %1685 = vmatprep.subr.bf16.mxu0 %v1881_v61 }
 0x3b3   : > { %1716 = vmatpush3.bf16.msra.mxu1 %v1888_v19 }
 0x3b4   : > { %1717 = vmatprep.subr.bf16.mxu1 %v1889_v17 }
 0x3b5   : > { %1686 = vmatpush3.bf16.msra.mxu0 %v1881_v61 }
 0x3b7   : > { %1718 = vmatpush3.bf16.msra.mxu1 %v1889_v17 }
 0x3b8   : > { %1688 = vmatmul.mubr.bf16.vlgmr.msra.gmra.mrb[0].mxu0 %v913_v63 }
 0x3b9   : > { %1691 = vmatprep.mubr.bf16.mxu0 %v914_v0 }
 0x3c0   : > { %1692 = vmatmul.mubr.bf16.gmra.mrb[4].mxu0 %v915_v1  ;;  %v1474_v1 = vld [vmem:[%s2533_s7] ss:$0 sm:$0xff] }
 0x3c1   : > { %1695 = vmatprep.mubr.bf16.mxu0 %v916_v2 }
 0x3c8   : > { %1696 = vmatmul.mubr.bf16.gmra.mrb[8].mxu0 %v917_v3 }
 0x3c9   : > { %1699 = vmatprep.mubr.bf16.mxu0 %v918_v9 }
 0x3d0   : > { %1700 = vmatmul.mubr.bf16.gmra.mrb[12].mxu0 %v919_v13 }
 0x48b   : > { %v1689_v10 = vpop.f32.mrb[0].mxu0 }
 0x48c   : > { %v1034_v14 = vadd.f32 %v1689_v10, %v1465_v12  ;;  %v1025_v16 = vpop.f32.mrb[1].mxu0 }
 0x48d   : > { %v1026_v20 = vadd.f32 %v1465_v12, %v1025_v16  ;;  %v1690_v21 = vpop.f32.mrb[2].mxu0 }
 0x48e   : > { %v1037_v23 = vadd.f32 %v1690_v21, %v1465_v12  ;;  %v1028_v24 = vpop.f32.mrb[3].mxu0  ;;  %v1090_v18 = vmax.f32 %v1034_v14, 0.0 }
 0x48f   : > { %v1029_v4 = vadd.f32 %v1465_v12, %v1028_v24  ;;  %v1088_v5 = vmax.f32 %v1026_v20, 0.0 }
 0x490   : > { %v1091_v22 = vmax.f32 %v1037_v23, 0.0 }
 0x491   : > { %v1089_v6 = vmax.f32 %v1029_v4, 0.0 }
 0x492   : > { %v1105_v7 = vpack.c.bf16 %v1091_v22, %v1090_v18 }
 0x493   : > { %v1693_v8 = vpop.f32.mrb[4].mxu0  ;;  %v1104_v25 = vpack.c.bf16 %v1089_v6, %v1088_v5 }
 0x494   : > { %v1050_v26 = vadd.f32 %v1693_v8, %v1465_v12  ;;  %v1041_v27 = vpop.f32.mrb[5].mxu0 }
 0x495   : > { %v1042_v28 = vadd.f32 %v1465_v12, %v1041_v27  ;;  %v1694_v29 = vpop.f32.mrb[6].mxu0  ;;  %1719 = vmatprep.mubr.bf16.mxu1 %v1104_v25 }
 0x496   : > { %v1053_v30 = vadd.f32 %v1694_v29, %v1465_v12  ;;  %v1044_v31 = vpop.f32.mrb[7].mxu0  ;;  %1720 = vmatmul.mubr.bf16.vlgmr.msra.gmra.mrb[0].mxu1 %v1105_v7  ;;  %v1094_v33 = vmax.f32 %v1050_v26, 0.0 }
 0x497   : > { %v1045_v32 = vadd.f32 %v1465_v12, %v1044_v31  ;;  %v1092_v35 = vmax.f32 %v1042_v28, 0.0 }
 0x498   : > { %v1095_v34 = vmax.f32 %v1053_v30, 0.0 }
 0x499   : > { %v1093_v36 = vmax.f32 %v1045_v32, 0.0 }
 0x49a   : > { %v1107_v37 = vpack.c.bf16 %v1095_v34, %v1094_v33 }
 0x49b   : > { %v1106_v38 = vpack.c.bf16 %v1093_v36, %v1092_v35  ;;  %v1697_v39 = vpop.f32.mrb[8].mxu0 }
 0x49c   : > { %v1066_v40 = vadd.f32 %v1697_v39, %v1465_v12  ;;  %v1057_v41 = vpop.f32.mrb[9].mxu0 }
 0x49d   : > { %v1058_v42 = vadd.f32 %v1465_v12, %v1057_v41  ;;  %v1698_v43 = vpop.f32.mrb[10].mxu0  ;;  %1723 = vmatprep.mubr.bf16.mxu1 %v1106_v38 }
 0x49e   : > { %v1069_v44 = vadd.f32 %v1698_v43, %v1465_v12  ;;  %v1060_v45 = vpop.f32.mrb[11].mxu0  ;;  %1724 = vmatmul.mubr.bf16.gmra.mrb[4].mxu1 %v1107_v37  ;;  %v1098_v47 = vmax.f32 %v1066_v40, 0.0 }
 0x49f   : > { %v1061_v46 = vadd.f32 %v1465_v12, %v1060_v45  ;;  %v1096_v49 = vmax.f32 %v1058_v42, 0.0 }
 0x4a0   : > { %v1099_v48 = vmax.f32 %v1069_v44, 0.0 }
 0x4a1   : > { %v1097_v50 = vmax.f32 %v1061_v46, 0.0 }
 0x4a2   : > { %v1109_v51 = vpack.c.bf16 %v1099_v48, %v1098_v47 }
 0x4a3   : > { %v1108_v52 = vpack.c.bf16 %v1097_v50, %v1096_v49  ;;  %v1701_v53 = vpop.f32.mrb[12].mxu0 }
 0x4a4   : > { %v1082_v54 = vadd.f32 %v1701_v53, %v1465_v12  ;;  %v1073_v55 = vpop.f32.mrb[13].mxu0 }
 0x4a5   : > { %v1074_v56 = vadd.f32 %v1465_v12, %v1073_v55  ;;  %v1702_v57 = vpop.f32.mrb[14].mxu0  ;;  %1727 = vmatprep.mubr.bf16.mxu1 %v1108_v52 }
 0x4a6   : > { %v1085_v58 = vadd.f32 %v1702_v57, %v1465_v12  ;;  %v1076_v11 = vpop.f32.mrb[15].mxu0  ;;  %1728 = vmatmul.mubr.bf16.gmra.mrb[8].mxu1 %v1109_v51  ;;  %v1102_v59 = vmax.f32 %v1082_v54, 0.0 }
 0x4a7   : > { %v1077_v15 = vadd.f32 %v1465_v12, %v1076_v11  ;;  %v1100_v61 = vmax.f32 %v1074_v56, 0.0 }
 0x4a8   : > { %v1103_v60 = vmax.f32 %v1085_v58, 0.0 }
 0x4a9   : > { %v1101_v62 = vmax.f32 %v1077_v15, 0.0 }
 0x4aa   : > { %v1111_v63 = vpack.c.bf16 %v1103_v60, %v1102_v59 }
 0x4ab   : > { %v1110_v0 = vpack.c.bf16 %v1101_v62, %v1100_v61 }
 0x4ad   : > { %1731 = vmatprep.mubr.bf16.mxu1 %v1110_v0 }
 0x4ae   : > { %1732 = vmatmul.mubr.bf16.gmra.mrb[12].mxu1 %v1111_v63 }
 0x569   : > { %v1721_v2 = vpop.f32.mrb[0].mxu1 }
 0x56a   : > { %v1226_v3 = vadd.f32 %v1721_v2, %v1474_v1  ;;  %v1217_v9 = vpop.f32.mrb[1].mxu1 }
 0x56b   : > { %v1218_v13 = vadd.f32 %v1474_v1, %v1217_v9  ;;  %v1722_v19 = vpop.f32.mrb[2].mxu1 }
 0x56c   : > { %1283 = vst [vmem:[#allocation12 + $0x10] sm:$0xff] %v1226_v3  ;;  %v1229_v17 = vadd.f32 %v1722_v19, %v1474_v1  ;;  %v1220_v12 = vpop.f32.mrb[3].mxu1 }
 0x56d   : > { %1281 = vst [vmem:[#allocation12] sm:$0xff] %v1218_v13  ;;  %v1221_v10 = vadd.f32 %v1474_v1, %v1220_v12 }
 0x56e   : > { %1284 = vst [vmem:[#allocation12 + $0x18] sm:$0xff] %v1229_v17 }
 0x56f   : > { %1282 = vst [vmem:[#allocation12 + $0x8] sm:$0xff] %v1221_v10 }
 0x571   : > { %v1725_v14 = vpop.f32.mrb[4].mxu1 }
 0x572   : > { %v1242_v16 = vadd.f32 %v1725_v14, %v1474_v1  ;;  %v1233_v20 = vpop.f32.mrb[5].mxu1 }
 0x573   : > { %v1234_v21 = vadd.f32 %v1474_v1, %v1233_v20  ;;  %v1726_v23 = vpop.f32.mrb[6].mxu1 }
 0x574   : > { %1287 = vst [vmem:[#allocation12 + $0x30] sm:$0xff] %v1242_v16  ;;  %v1245_v24 = vadd.f32 %v1726_v23, %v1474_v1  ;;  %v1236_v4 = vpop.f32.mrb[7].mxu1 }
 0x575   : > { %1285 = vst [vmem:[#allocation12 + $0x20] sm:$0xff] %v1234_v21  ;;  %v1237_v18 = vadd.f32 %v1474_v1, %v1236_v4 }
 0x576   : > { %1288 = vst [vmem:[#allocation12 + $0x38] sm:$0xff] %v1245_v24 }
 0x577   : > { %1286 = vst [vmem:[#allocation12 + $0x28] sm:$0xff] %v1237_v18 }
 0x579   : > { %v1729_v22 = vpop.f32.mrb[8].mxu1 }
 0x57a   : > { %v1258_v5 = vadd.f32 %v1729_v22, %v1474_v1  ;;  %v1249_v6 = vpop.f32.mrb[9].mxu1 }
 0x57b   : > { %v1250_v7 = vadd.f32 %v1474_v1, %v1249_v6  ;;  %v1730_v8 = vpop.f32.mrb[10].mxu1 }
 0x57c   : > { %1291 = vst [vmem:[#allocation12 + $0x50] sm:$0xff] %v1258_v5  ;;  %v1261_v25 = vadd.f32 %v1730_v8, %v1474_v1  ;;  %v1252_v26 = vpop.f32.mrb[11].mxu1 }
 0x57d   : > { %1289 = vst [vmem:[#allocation12 + $0x40] sm:$0xff] %v1250_v7  ;;  %v1253_v27 = vadd.f32 %v1474_v1, %v1252_v26 }
 0x57e   : > { %1292 = vst [vmem:[#allocation12 + $0x58] sm:$0xff] %v1261_v25 }
 0x57f   : > { %1290 = vst [vmem:[#allocation12 + $0x48] sm:$0xff] %v1253_v27 }
 0x581   : > { %v1733_v28 = vpop.f32.mrb[12].mxu1 }
 0x582   : > { %v1274_v29 = vadd.f32 %v1733_v28, %v1474_v1  ;;  %v1265_v30 = vpop.f32.mrb[13].mxu1 }
 0x583   : > { %v1266_v31 = vadd.f32 %v1474_v1, %v1265_v30  ;;  %v1734_v32 = vpop.f32.mrb[14].mxu1 }
 0x584   : > { %1295 = vst [vmem:[#allocation12 + $0x70] sm:$0xff] %v1274_v29  ;;  %v1277_v33 = vadd.f32 %v1734_v32, %v1474_v1  ;;  %v1268_v34 = vpop.f32.mrb[15].mxu1 }
 0x585   : > { %1293 = vst [vmem:[#allocation12 + $0x60] sm:$0xff] %v1266_v31  ;;  %v1269_v35 = vadd.f32 %v1474_v1, %v1268_v34 }
 0x586   : > { %1296 = vst [vmem:[#allocation12 + $0x78] sm:$0xff] %v1277_v33 }
 0x587   : > { %1294 = vst [vmem:[#allocation12 + $0x68] sm:$0xff] %v1269_v35 }
 0x588 PF: > { %s2549_s10 = sadd.s32 4294967295, %s2112_s11   ;;  %s2122_s12 = smov [#allocation11]  }
 0x589   : > { %p2469_p1 = scmp.eq.s32.totalorder %s2549_s10, 1  ;;  %s1303_s25 = sshll.u32 %s2122_s12, 4  ;;  %s1304_s25 = int_to_ptr.vmem [resolvable:$true] %s1303_s25 }
 0x58a   : > { %s2018_s17 = scalar_lea.vmem %s1304_s25, 2048  ;;  %p2025_p3 = scmp.lt.s32.totalorder %s1304_s25, %s1304_s25 }
 0x58b   : > { %p2019_p4 = scmp.ne.s32.totalorder %s1304_s25, %s2018_s17  ;;  %p2026_p8 = scmp.lt.s32.totalorder %s2018_s17, %s2018_s17 }
 0x58d   : > { %p2020_p7 = pnand %p2019_p4, %p2469_p1  ;;  %p2027_p5 = por %p2026_p8, %p2025_p3 }
 0x58f   : > { %p2021_p9 = pneg %p2020_p7 }
 0x591   : > { %p2028_p2 = pnand %p2027_p5, %p2021_p9 }
 0x593   : > { %2031 = shalt.err (!%p2028_p2)
}
 0x594   : > { %s2032_s20 = scalar_lea.hbm %s2534_s8, 2048 }
 0x595   : > { %p2033_p10 = scmp.ne.s32.totalorder %s2534_s8, %s2032_s20  ;;  %p2038_p13 = scmp.lt.u32.totalorder %s2032_s20, %s2534_s8 }
 0x597   : > { %p2034_p11 = pnand %p2033_p10, %p2469_p1 }
 0x599   : > { %p2035_p12 = pneg %p2034_p11 }
 0x59b   : > { %p2040_p6 = pnand %p2038_p13, %p2035_p12 }
 0x59d   : > { %2043 = shalt.err (!%p2040_p6)
}
 0x59e   : > { %s2123_s29 = smov 128   ;;  %s2124_s15 = smov 8  }
 0x59f   : > { %1796 = dma.vmem_to_hbm [thread:$0]  (%p2469_p1), %s1304_s25, 2048, %s2534_s8, [#allocation7], %s2123_s29, %s2123_s29, %s2124_s15  }
 0x5a0   : > { %s2125_s22 = smov [#allocation12]  }
 0x5a1   : > { %s1316_s19 = sshll.u32 %s2125_s22, 4  ;;  %s1317_s19 = int_to_ptr.vmem [resolvable:$true] %s1316_s19 }
 0x5a2   : > { %s2044_s21 = scalar_lea.vmem %s1317_s19, 2048  ;;  %p2051_p9 = scmp.lt.s32.totalorder %s1317_s19, %s1317_s19 }
 0x5a3   : > { %p2045_p0 = scmp.ne.s32.totalorder %s1317_s19, %s2044_s21  ;;  %p2052_p3 = scmp.lt.s32.totalorder %s2044_s21, %s2044_s21 }
 0x5a5   : > { %p2046_p4 = pnand %p2045_p0, %p2469_p1  ;;  %p2053_p8 = por %p2052_p3, %p2051_p9 }
 0x5a7   : > { %p2047_p7 = pneg %p2046_p4 }
 0x5a9   : > { %p2054_p5 = pnand %p2053_p8, %p2047_p7 }
 0x5ab   : > { %2057 = shalt.err (!%p2054_p5)
}
 0x5ac   : > { %s2058_s17 = scalar_lea.hbm %s2535_s9, 2048 }
 0x5ad   : > { %p2059_p2 = scmp.ne.s32.totalorder %s2535_s9, %s2058_s17  ;;  %p2064_p12 = scmp.lt.u32.totalorder %s2058_s17, %s2535_s9 }
 0x5af   : > { %p2060_p10 = pnand %p2059_p2, %p2469_p1 }
 0x5b1   : > { %p2061_p11 = pneg %p2060_p10 }
 0x5b3   : > { %p2066_p13 = pnand %p2064_p12, %p2061_p11 }
 0x5b5   : > { %2069 = shalt.err (!%p2066_p13)
}
 0x5b6   : > { %1798 = dma.vmem_to_hbm [thread:$0]  (%p2469_p1), %s1317_s19, 2048, %s2535_s9, [#allocation13], %s2123_s29, %s2123_s29, %s2124_s15  }
 0x5b7   : > { %2095 = dma.done.wait (%p2469_p1), [#allocation7], 2048  }
 0x5b8   : > { %2097 = vsyncadd (%p2469_p1), [#allocation7], 4294965248 }
 0x5b9   : > { %2099 = dma.done.wait (%p2469_p1), [#allocation13], 2048  }
 0x5ba   : > { %2101 = vsyncadd (%p2469_p1), [#allocation13], 4294965248 }
 0x5bb PF: > { %s24_s11 = sadd.s32 1, %s2112_s11   ;;  %s2551_s30 = sld [smem:[#allocation26_spill]] }
 0x5bc   : > { %p21_p6 = scmp.ge.s32.totalorder %s24_s11, 4   ;;  %s2552_s10 = smov %s2554_s18 }
 0x5be   :  { %23 = sbr.rel (!%p21_p6) target bundleno = 5 (0x5), region = 120 }
 0x5c5   :  { %1336 = vsyncpa [#allocation6], 1 }
 0x5c6   :  { %1338 = vsyncpa [#allocation6 + $0x1], 1 }
 0x5c7   :  { %1339 = vsyncpa [#allocation9], 1 }
 0x5c8   :  { %1340 = vsyncpa [#allocation7], 1 }
 0x5c9   :  { %1342 = vsyncpa [#allocation7 + $0x1], 1 }
 0x5ca   :  { %1343 = vsyncpa [#allocation13], 1 }
 0x5cb   :  { %1344 = vsyncmov [#allocation3] }
 0x5ce   :  { %s1345_s23 = vpop.sfrf %1344 }
 0x5cf   :  { %p1489_p1 = scmp.ne.s32.totalorder %s1345_s23, 0 }
 0x5d1   :  { %1349 = shalt.err (%p1489_p1)  }
 0x5d2   :  { %1351 = vsyncmov [#allocation3 + $0x1] }
 0x5d5   :  { %s1352_s26 = vpop.sfrf %1351 }
 0x5d6   :  { %p1490_p0 = scmp.ne.s32.totalorder %s1352_s26, 0 }
 0x5d8   :  { %1356 = shalt.err (%p1490_p0)  }

</bundles_post_ra>
